<compile_context>
chip_gen: v7x
topology: tpu7x:2x2x1
jax: 0.10.0
libtpu: 0.0.40
codegen_flags: <defaults>
</compile_context>

<pallas_src>
import functools

import jax
import jax.numpy as jnp
from jax.experimental import pallas as pl
from jax.experimental.pallas import tpu as pltpu  # noqa: F401  (TPU backend)

CODE = {'input0': 0, 'input1': 1, 'output': 2}

NEG_SLOPE = 0.2
EPS = 1e-12
NEG_BIG = -1e30   # stands in for -inf before softmax (exp underflows to exactly 0)

# bias row order inside the packed head-slab bias block
_BIAS_ROWS = ('bf1', 'bg1', 'bf2', 'bg2', 'b_an', 'b_an2',
              'b_init', 'b_init2', 'b_s1', 'b_s2')


def _align8(x):
    return (x + 7) // 8 * 8


def _leaky_relu(x):
    return jnp.where(x >= 0, x, NEG_SLOPE * x)


def _l2_normalize(x):
    n = jnp.sqrt(jnp.sum(x * x, axis=-1, keepdims=True))
    return x / jnp.maximum(n, EPS)


# --------------------------- packed parameter layouts ------------------------

def _head_layout(ndim, sdim, latent_dim, natts):
    """Row-packed layout {name: (offset, rows, cols)} of all head weights."""
    width = max(sdim, ndim, ndim + sdim, natts, 1)
    blocks = [
        ('wf1', ndim, sdim), ('wg1', ndim, 1),            # GraphAggr (graph_emb)
        ('wf2', ndim, sdim), ('wg2', ndim, 1),            # GraphAggr (graph_emb_init)
        ('w_an', sdim + latent_dim, sdim),                # NodeAdd.f_an
        ('w_an2', sdim, natts),                           # NodeAdd.f_an_2
        ('emb', natts, ndim),                             # NodeInit.NodeInits
        ('w_init', ndim + sdim + latent_dim, ndim + sdim),
        ('w_init2', ndim + sdim, ndim),
        ('w_s1', 2 * ndim + sdim + latent_dim, ndim + sdim),
        ('w_s2', ndim + sdim, 1),
        ('bias', len(_BIAS_ROWS), width),                 # all biases, one row each
    ]
    layout, off = {}, 0
    for name, rows, cols in blocks:
        layout[name] = (off, rows, cols)
        off = _align8(off + rows)
    return layout, off, width


def _gnn_layout(ndim):
    """Per-layer row offsets inside the packed GNN slab (width = 3*ndim)."""
    n = ndim
    return dict(wmsg=0, wrev=2 * n, wih=4 * n, whh=6 * n, bias=7 * n,
                stride=_align8(7 * n + 4), width=3 * n)


# --------------------------- fused kernel bodies -----------------------------

def _gnn_body(sdcol_ref, drow_ref, gnn_ref, hn, *, num_layers, E, N, ndim):
    """All GNNLayer iterations + final F.normalize, hn resident in VMEM."""
    dot = lambda a, b: jnp.dot(a, b, preferred_element_type=jnp.float32)
    n = ndim
    E2 = 2 * E
    gl = _gnn_layout(ndim)

    src = sdcol_ref[:, 0:1]                                      # (2E, 1) int32
    dst = sdcol_ref[:, 1:2]                                      # (2E, 1) int32
    dst_row = drow_ref[...]                                      # (1, 2E) int32

    # one-hot gather / scatter matrices built once (edges fixed across layers)
    node_e = jax.lax.broadcasted_iota(jnp.int32, (E2, N), 1)
    g_src = (node_e == src).astype(jnp.float32)                  # (2E, N)
    g_dst = (node_e == dst).astype(jnp.float32)                  # (2E, N)
    node_n = jax.lax.broadcasted_iota(jnp.int32, (N, E2), 0)
    scat = (node_n == dst_row).astype(jnp.float32)               # (N, 2E)

    is_fwd = (jax.lax.broadcasted_iota(jnp.int32, (E2, 1), 0) < E).astype(jnp.float32)
    is_rev = 1.0 - is_fwd
    # fold fwd/rev message selection into the gather matrices (no lane select later)
    g_src_f, g_src_r = g_src * is_fwd, g_src * is_rev
    g_dst_f, g_dst_r = g_dst * is_fwd, g_dst * is_rev

    # TODO(synk): switch to lax.fori_loop + dynamic leading-axis weight indexing
    # if num_layers ever grows past a handful.
    for l in range(num_layers):                                  # static unroll
        base = l * gl['stride']
        wmsg = gnn_ref[base + gl['wmsg']: base + gl['wmsg'] + 2 * n, 0:2 * n]
        wrev = gnn_ref[base + gl['wrev']: base + gl['wrev'] + 2 * n, 0:2 * n]
        wih = gnn_ref[base + gl['wih']: base + gl['wih'] + 2 * n, 0:3 * n]
        whh = gnn_ref[base + gl['whh']: base + gl['whh'] + n, 0:3 * n]
        brs = gnn_ref[base + gl['bias']: base + gl['bias'] + 4, :]
        b_msg, b_rev = brs[0:1, 0:2 * n], brs[1:2, 0:2 * n]
        b_ih, b_hh = brs[2:3, 0:3 * n], brs[3:4, 0:3 * n]

        # F.dropout(p=0.0) is identity.
        # message: msg([h_j|h_i]) on forward edges, msg_rev(...) on reversed
        # edges, written as a sum of masked partial dots (no concat, no where).
        hj_f, hi_f = dot(g_src_f, hn), dot(g_dst_f, hn)          # (2E, n)
        hj_r, hi_r = dot(g_src_r, hn), dot(g_dst_r, hn)
        a = (dot(hj_f, wmsg[:n]) + dot(hi_f, wmsg[n:]) +
             dot(hj_r, wrev[:n]) + dot(hi_r, wrev[n:]) +
             is_fwd * b_msg + is_rev * b_rev)                    # (2E, 2n)

        aggr = dot(scat, a)                                      # (N, 2n) scatter-add
        # GRUCell(aggr, hn) -- PyTorch gate order r, z, n (packed column-wise)
        gi = dot(aggr, wih) + b_ih                               # (N, 3n)
        gh = dot(hn, whh) + b_hh                                 # (N, 3n)
        r = jax.nn.sigmoid(gi[:, :n] + gh[:, :n])
        zg = jax.nn.sigmoid(gi[:, n:2 * n] + gh[:, n:2 * n])
        ng = jnp.tanh(gi[:, 2 * n:] + r * gh[:, 2 * n:])
        hn = (1.0 - zg) * ng + zg * hn

    return _l2_normalize(hn)


def _heads_body(head_ref, hn, z, out_h_ref, out_misc_ref, out_edge_ref,
                *, B, idx, ndim, sdim, latent_dim, natts, force_output, L):
    """Dual GraphAggr(gsum) + NodeAdd + NodeInit + EdgeAdd + packed stores."""
    dot = lambda a, b: jnp.dot(a, b, preferred_element_type=jnp.float32)
    N = B * idx
    d2 = ndim + sdim

    def blk(name):
        off, r, c = L[name]
        return head_ref[off:off + r, 0:c]

    boff = L['bias'][0]
    bias = head_ref[boff: boff + len(_BIAS_ROWS), :]
    bf1 = bias[0:1, 0:sdim]
    bg1 = bias[1:2, 0:1]
    bf2 = bias[2:3, 0:sdim]
    bg2 = bias[3:4, 0:1]
    b_an = bias[4:5, 0:sdim]
    b_an2 = bias[5:6, 0:natts]
    b_init = bias[6:7, 0:d2]
    b_init2 = bias[7:8, 0:ndim]
    b_s1 = bias[8:9, 0:d2]
    b_s2 = bias[9:10, 0:1]

    # ---- dual GraphAggr (gsum) ------------------------------------------------
    f1 = dot(hn, blk('wf1')) + bf1                               # (N, sdim)
    g1 = jax.nn.sigmoid(dot(hn, blk('wg1')) + bg1)               # (N, 1)
    f2 = dot(hn, blk('wf2')) + bf2
    g2 = jax.nn.sigmoid(dot(hn, blk('wg2')) + bg2)
    b_r = jax.lax.broadcasted_iota(jnp.int32, (B, N), 0)
    n_c = jax.lax.broadcasted_iota(jnp.int32, (B, N), 1)
    grp = ((n_c >= b_r * idx) & (n_c < (b_r + 1) * idx)).astype(jnp.float32)
    h_G = _l2_normalize(dot(grp, f1 * g1))                       # (B, sdim)
    h_Gi = _l2_normalize(dot(grp, f2 * g2))                      # (B, sdim)

    # ---- NodeAdd (cat([h_G, z]) as sum of row-split dots) ----------------------
    ao = L['w_an'][0]
    s = _leaky_relu(dot(h_G, head_ref[ao:ao + sdim, 0:sdim]) +
                    dot(z, head_ref[ao + sdim:ao + sdim + latent_dim, 0:sdim]) +
                    b_an)
    logit = dot(s, blk('w_an2')) + b_an2                         # (B, natts)
    col = jax.lax.broadcasted_iota(jnp.int32, (B, natts), 1)
    masked = jnp.where((col == CODE['input0']) | (col == CODE['input1']),
                       NEG_BIG, logit)
    mx = jnp.max(masked, axis=-1, keepdims=True)
    ex = jnp.exp(masked - mx)
    probs = ex / jnp.sum(ex, axis=-1, keepdims=True)
    colf = col.astype(jnp.float32)
    # argmax, lowest-index tie-break (matches torch.topk only when maxima are
    # bit-identical -- acceptable for generation)
    cand = jnp.where(masked == mx, colf, float(natts))
    att = jnp.min(cand, axis=-1, keepdims=True)                  # (B, 1)
    if force_output:                  # static python branch: idx >= stop - 1
        att = jnp.full_like(att, float(CODE['output']))
    nodes = (colf == att).astype(jnp.float32)                    # (B, natts) one-hot
    if force_output:
        probs = nodes
    no_stop = (att != float(CODE['output'])).astype(jnp.float32)  # (B, 1)

    # ---- NodeInit (embedding lookup as one-hot matmul, row-split f_init) -------
    e = dot(nodes, blk('emb'))                                   # (B, ndim)
    io = L['w_init'][0]
    x = (dot(e, head_ref[io:io + ndim, 0:d2]) +
         dot(h_Gi, head_ref[io + ndim:io + ndim + sdim, 0:d2]) +
         dot(z, head_ref[io + ndim + sdim:io + ndim + sdim + latent_dim, 0:d2]) +
         b_init)
    h_v = _l2_normalize(dot(_leaky_relu(x), blk('w_init2')) + b_init2)   # (B, ndim)

    # ---- EdgeAdd ----------------------------------------------------------------
    # Reference pairing (matches torch): h / h_v rows are graph-grouped (r // idx),
    # h_G / z rows are tiled (r % B).  Selection matrices are div-free iota builds;
    # W_s1 is applied to B rows first, then expanded (matmul associativity).
    r_i = jax.lax.broadcasted_iota(jnp.int32, (N, B), 0)
    b_i = jax.lax.broadcasted_iota(jnp.int32, (N, B), 1)
    rep = ((r_i >= b_i * idx) & (r_i < (b_i + 1) * idx)).astype(jnp.float32)
    tile = jnp.zeros((N, B), jnp.float32)
    for k in range(idx):              # r % B == b  <=>  r == k*B + b for some k
        tile = tile + (r_i == k * B + b_i).astype(jnp.float32)
    so = L['w_s1'][0]
    s_pre = (dot(hn, head_ref[so:so + ndim, 0:d2]) +
             dot(rep, dot(h_v, head_ref[so + ndim:so + 2 * ndim, 0:d2])) +
             dot(tile,
                 dot(h_G, head_ref[so + 2 * ndim:so + 2 * ndim + sdim, 0:d2]) +
                 dot(z, head_ref[so + 2 * ndim + sdim:
                                 so + 2 * ndim + sdim + latent_dim, 0:d2])) +
             b_s1)                                               # (N, d2)
    edge = jax.nn.sigmoid(dot(_leaky_relu(s_pre), blk('w_s2')) + b_s2)   # (N, 1)

    # ---- packed outputs ---------------------------------------------------------
    out_misc_ref[:, 0:natts] = nodes
    out_misc_ref[:, natts:2 * natts] = probs
    out_misc_ref[:, 2 * natts:2 * natts + 1] = no_stop
    out_edge_ref[...] = edge
    for b in range(B):                # torch.cat([h, h_v.unsqueeze(1)], 1) in-kernel
        out_h_ref[b, 0:idx, :] = hn[b * idx:(b + 1) * idx, :]
        out_h_ref[b, idx:idx + 1, :] = h_v[b:b + 1, :]


def _fused_kernel_edges(sdcol_ref, drow_ref, h_ref, z_ref, gnn_ref, head_ref,
                        out_h_ref, out_misc_ref, out_edge_ref, *,
                        num_layers, E, N, B, idx, ndim, sdim, latent_dim, natts,
                        force_output, L):
    hn = _gnn_body(sdcol_ref, drow_ref, gnn_ref, h_ref[...],
                   num_layers=num_layers, E=E, N=N, ndim=ndim)
    _heads_body(head_ref, hn, z_ref[...], out_h_ref, out_misc_ref, out_edge_ref,
                B=B, idx=idx, ndim=ndim, sdim=sdim, latent_dim=latent_dim,
                natts=natts, force_output=force_output, L=L)


def _fused_kernel_noedges(h_ref, z_ref, head_ref,
                          out_h_ref, out_misc_ref, out_edge_ref, *,
                          B, idx, ndim, sdim, latent_dim, natts, force_output, L):
    # torch: with an empty edge_index the node features pass through UN-normalized
    _heads_body(head_ref, h_ref[...], z_ref[...],
                out_h_ref, out_misc_ref, out_edge_ref,
                B=B, idx=idx, ndim=ndim, sdim=sdim, latent_dim=latent_dim,
                natts=natts, force_output=force_output, L=L)


# --------------------------- parameter init (packed slabs) --------------------

def _init_linear(key, in_dim, out_dim):
    kw, kb = jax.random.split(key)
    bound = 1.0 / (in_dim ** 0.5)
    w = jax.random.uniform(kw, (in_dim, out_dim), jnp.float32, -bound, bound)
    b = jax.random.uniform(kb, (out_dim,), jnp.float32, -bound, bound)
    return w, b


def init_params(key, num_node_atts, latent_dim, ndim, sdim, num_layers):
    natts = num_node_atts
    keys = iter(jax.random.split(key, 8 * num_layers + 16))
    nxt = lambda: next(keys)

    # ---- GNN slab: per layer [W_msg | W_rev | W_ih(r|z|n) | W_hh(r|z|n) | 4 bias rows]
    n = ndim
    gl = _gnn_layout(ndim)
    gnn = jnp.zeros((num_layers * gl['stride'], gl['width']), jnp.float32)
    for l in range(num_layers):
        base = l * gl['stride']
        wm, bm = _init_linear(nxt(), 2 * n, 2 * n)
        wr, br = _init_linear(nxt(), 2 * n, 2 * n)
        wi, bi_, wh, bh = [], [], [], []
        for _g in range(3):                                   # GRU gates r, z, n
            w, b = _init_linear(nxt(), 2 * n, n); wi.append(w); bi_.append(b)
            w, b = _init_linear(nxt(), n, n);     wh.append(w); bh.append(b)
        wih, bih = jnp.concatenate(wi, 1), jnp.concatenate(bi_)
        whh, bhh = jnp.concatenate(wh, 1), jnp.concatenate(bh)
        gnn = gnn.at[base + gl['wmsg']:base + gl['wmsg'] + 2 * n, :2 * n].set(wm)
        gnn = gnn.at[base + gl['wrev']:base + gl['wrev'] + 2 * n, :2 * n].set(wr)
        gnn = gnn.at[base + gl['wih']:base + gl['wih'] + 2 * n, :3 * n].set(wih)
        gnn = gnn.at[base + gl['whh']:base + gl['whh'] + n, :3 * n].set(whh)
        gnn = gnn.at[base + gl['bias'] + 0, :2 * n].set(bm)
        gnn = gnn.at[base + gl['bias'] + 1, :2 * n].set(br)
        gnn = gnn.at[base + gl['bias'] + 2, :3 * n].set(bih)
        gnn = gnn.at[base + gl['bias'] + 3, :3 * n].set(bhh)

    # ---- head slab
    L, rows, width = _head_layout(ndim, sdim, latent_dim, natts)
    head = jnp.zeros((rows, width), jnp.float32)

    def put(slab, name, w):
        off = L[name][0]
        return slab.at[off:off + w.shape[0], :w.shape[1]].set(w)

    wf1, bf1 = _init_linear(nxt(), ndim, sdim)
    wg1, bg1 = _init_linear(nxt(), ndim, 1)
    wf2, bf2 = _init_linear(nxt(), ndim, sdim)
    wg2, bg2 = _init_linear(nxt(), ndim, 1)
    w_an, b_an = _init_linear(nxt(), sdim + latent_dim, sdim)
    w_an2, b_an2 = _init_linear(nxt(), sdim, natts)
    emb = 0.1 * jax.random.normal(nxt(), (natts, ndim), jnp.float32)
    w_init, b_init = _init_linear(nxt(), ndim + sdim + latent_dim, ndim + sdim)
    w_init2, b_init2 = _init_linear(nxt(), ndim + sdim, ndim)
    w_s1, b_s1 = _init_linear(nxt(), 2 * ndim + sdim + latent_dim, ndim + sdim)
    w_s2, b_s2 = _init_linear(nxt(), ndim + sdim, 1)
    for name, w in (('wf1', wf1), ('wg1', wg1), ('wf2', wf2), ('wg2', wg2),
                    ('w_an', w_an), ('w_an2', w_an2), ('emb', emb),
                    ('w_init', w_init), ('w_init2', w_init2),
                    ('w_s1', w_s1), ('w_s2', w_s2)):
        head = put(head, name, w)
    boff = L['bias'][0]
    for i, b in enumerate((bf1, bg1, bf2, bg2, b_an, b_an2,
                           b_init, b_init2, b_s1, b_s2)):
        head = head.at[boff + i, :b.shape[0]].set(b)

    # NodeInit.f_start path and GraphAggr aggr='mean' are unreachable from
    # StepGenerator.forward and not represented.
    return dict(gnn_slab=gnn, head_slab=head)


# --------------------------- forward pass ------------------------------------

def step_generator_forward(params, h, z, edge_index, *,
                           num_node_atts, ndim, sdim, latent_dim, stop, num_layers):
    B, idx, _ = h.shape
    N = B * idx
    natts = num_node_atts
    h_flat = h.reshape(N, ndim).astype(jnp.float32)
    z = z.astype(jnp.float32)
    E = edge_index.shape[1]                    # static
    force_output = idx >= stop - 1             # static python condition, same as torch
    L, _, _ = _head_layout(ndim, sdim, latent_dim, natts)

    out_shapes = (
        jax.ShapeDtypeStruct((B, idx + 1, ndim), jnp.float32),   # h_out = cat([h, h_v], 1)
        jax.ShapeDtypeStruct((B, 2 * natts + 1), jnp.float32),   # [nodes | prob | no_stop]
        jax.ShapeDtypeStruct((N, 1), jnp.float32),               # edge sigmoid
    )
    common = dict(B=B, idx=idx, ndim=ndim, sdim=sdim, latent_dim=latent_dim,
                  natts=natts, force_output=force_output, L=L)

    if E > 0:
        # append reversed edges (torch.index_select(edge_index, 0, [1, 0]))
        src_all = jnp.concatenate([edge_index[0], edge_index[1]]).astype(jnp.int32)
        dst_all = jnp.concatenate([edge_index[1], edge_index[0]]).astype(jnp.int32)
        sdcol = jnp.stack([src_all, dst_all], axis=1)            # (2E, 2) int32
        drow = dst_all.reshape(1, 2 * E)                         # (1, 2E) int32
        kern = functools.partial(_fused_kernel_edges,
                                 num_layers=num_layers, E=E, N=N, **common)
        out_h, out_misc, out_edge = pl.pallas_call(kern, out_shape=out_shapes)(
            sdcol, drow, h_flat, z, params['gnn_slab'], params['head_slab'])
    else:
        kern = functools.partial(_fused_kernel_noedges, **common)
        out_h, out_misc, out_edge = pl.pallas_call(kern, out_shape=out_shapes)(
            h_flat, z, params['head_slab'])

    nodes = out_misc[:, 0:natts]
    node_prob = out_misc[:, natts:2 * natts]
    no_stop = out_misc[:, 2 * natts] > 0.5
    edge_prob = out_edge.reshape(B, idx)
    edges = (edge_prob > 0.5).astype(jnp.float32)
    return out_h, nodes, edges, no_stop, node_prob, edge_prob


# --------------------------- main --------------------------------------------

if __name__ == "__main__":
    num_node_atts, latent_dim, ndim, sdim = 6, 8, 16, 16
    num_layers, dropout, aggr, stop = 2, 0.0, 'gsum', 11
    B, idx = 2, 4

    key = jax.random.PRNGKey(0)
    kp, kh, kz = jax.random.split(key, 3)
    params = init_params(kp, num_node_atts, latent_dim, ndim, sdim, num_layers)
    h = jax.random.normal(kh, (B, idx, ndim), jnp.float32)
    z = jax.random.normal(kz, (B, latent_dim), jnp.float32)
    # PyG-style flat node indexing across the batch: graph0 -> nodes 0..3,
    # graph1 -> nodes 4..7; simple chains.
    edge_index = jnp.array([[0, 1, 2, 4, 5, 6],
                            [1, 2, 3, 5, 6, 7]], dtype=jnp.int32)

    fwd = jax.jit(functools.partial(
        step_generator_forward,
        num_node_atts=num_node_atts, ndim=ndim, sdim=sdim,
        latent_dim=latent_dim, stop=stop, num_layers=num_layers))
    out = fwd(params, h, z, edge_index)
    jax.block_until_ready(out)
    h_new, nodes, edges, no_stop, node_prob, edge_prob = out
    assert h_new.shape == (B, idx + 1, ndim)
    assert nodes.shape == (B, num_node_atts)
    assert edges.shape == (B, idx)
    assert node_prob.shape == (B, num_node_atts)
    assert edge_prob.shape == (B, idx)
    assert no_stop.shape == (B,)
    print("KERNEL_OK")
</pallas_src>

<mosaic_0001>
module attributes {stable_mosaic.version = 11 : i64} {
  func.func @_fused_kernel_edges(%arg0: memref<12x2xi32, #tpu.memory_space<vmem>>, %arg1: memref<1x12xi32, #tpu.memory_space<vmem>>, %arg2: memref<8x16xf32, #tpu.memory_space<vmem>>, %arg3: memref<2x8xf32, #tpu.memory_space<vmem>>, %arg4: memref<240x48xf32, #tpu.memory_space<vmem>>, %arg5: memref<288x32xf32, #tpu.memory_space<vmem>>, %arg6: memref<2x5x16xf32, #tpu.memory_space<vmem>>, %arg7: memref<2x13xf32, #tpu.memory_space<vmem>>, %arg8: memref<8x1xf32, #tpu.memory_space<vmem>>) attributes {dimension_semantics = [], scalar_prefetch = 0 : i64, scratch_operands = 0 : i64, tpu.core_type = #tpu.core_type<tc>} {
    %c0 = arith.constant 0 : index
    %c0_0 = arith.constant 0 : index
    %0 = vector.load %arg2[%c0, %c0_0] : memref<8x16xf32, #tpu.memory_space<vmem>>, vector<8x16xf32>
    %c0_1 = arith.constant 0 : index
    %c0_2 = arith.constant 0 : index
    %1 = vector.load %arg0[%c0_1, %c0_2] : memref<12x2xi32, #tpu.memory_space<vmem>>, vector<12x1xi32>
    %c0_3 = arith.constant 0 : index
    %c1 = arith.constant 1 : index
    %2 = vector.load %arg0[%c0_3, %c1] : memref<12x2xi32, #tpu.memory_space<vmem>>, vector<12x1xi32>
    %c0_4 = arith.constant 0 : index
    %c0_5 = arith.constant 0 : index
    %3 = vector.load %arg1[%c0_4, %c0_5] : memref<1x12xi32, #tpu.memory_space<vmem>>, vector<1x12xi32>
    %4 = tpu.iota {dimensions = array<i32: 1>} : vector<12x8xi32>
    %5 = vector.broadcast %1 : vector<12x1xi32> to vector<12x8xi32>
    %6 = arith.cmpi eq, %4, %5 : vector<12x8xi32>
    %7 = arith.extui %6 : vector<12x8xi1> to vector<12x8xi32>
    %8 = arith.sitofp %7 : vector<12x8xi32> to vector<12x8xf32>
    %9 = vector.broadcast %2 : vector<12x1xi32> to vector<12x8xi32>
    %10 = arith.cmpi eq, %4, %9 : vector<12x8xi32>
    %11 = arith.extui %10 : vector<12x8xi1> to vector<12x8xi32>
    %12 = arith.sitofp %11 : vector<12x8xi32> to vector<12x8xf32>
    %13 = tpu.iota {dimensions = array<i32: 0>} : vector<8x12xi32>
    %14 = vector.broadcast %3 : vector<1x12xi32> to vector<8x12xi32>
    %15 = arith.cmpi eq, %13, %14 : vector<8x12xi32>
    %16 = arith.extui %15 : vector<8x12xi1> to vector<8x12xi32>
    %17 = arith.sitofp %16 : vector<8x12xi32> to vector<8x12xf32>
    %18 = tpu.iota {dimensions = array<i32: 0>} : vector<12x1xi32>
    %c6_i32 = arith.constant 6 : i32
    %19 = vector.broadcast %c6_i32 : i32 to vector<12x1xi32>
    %20 = arith.cmpi slt, %18, %19 : vector<12x1xi32>
    %21 = arith.extui %20 : vector<12x1xi1> to vector<12x1xi32>
    %22 = arith.sitofp %21 : vector<12x1xi32> to vector<12x1xf32>
    %cst = arith.constant 1.000000e+00 : f32
    %23 = vector.broadcast %cst : f32 to vector<12x1xf32>
    %24 = arith.subf %23, %22 : vector<12x1xf32>
    %25 = vector.broadcast %22 : vector<12x1xf32> to vector<12x8xf32>
    %26 = arith.mulf %8, %25 : vector<12x8xf32>
    %27 = vector.broadcast %24 : vector<12x1xf32> to vector<12x8xf32>
    %28 = arith.mulf %8, %27 : vector<12x8xf32>
    %29 = vector.broadcast %22 : vector<12x1xf32> to vector<12x8xf32>
    %30 = arith.mulf %12, %29 : vector<12x8xf32>
    %31 = vector.broadcast %24 : vector<12x1xf32> to vector<12x8xf32>
    %32 = arith.mulf %12, %31 : vector<12x8xf32>
    %c0_6 = arith.constant 0 : index
    %c0_7 = arith.constant 0 : index
    %33 = vector.load %arg4[%c0_6, %c0_7] : memref<240x48xf32, #tpu.memory_space<vmem>>, vector<32x32xf32>
    %c32 = arith.constant 32 : index
    %c0_8 = arith.constant 0 : index
    %34 = vector.load %arg4[%c32, %c0_8] : memref<240x48xf32, #tpu.memory_space<vmem>>, vector<32x32xf32>
    %c64 = arith.constant 64 : index
    %c0_9 = arith.constant 0 : index
    %35 = vector.load %arg4[%c64, %c0_9] : memref<240x48xf32, #tpu.memory_space<vmem>>, vector<32x48xf32>
    %c96 = arith.constant 96 : index
    %c0_10 = arith.constant 0 : index
    %36 = vector.load %arg4[%c96, %c0_10] : memref<240x48xf32, #tpu.memory_space<vmem>>, vector<16x48xf32>
    %c112 = arith.constant 112 : index
    %c0_11 = arith.constant 0 : index
    %37 = vector.load %arg4[%c112, %c0_11] : memref<240x48xf32, #tpu.memory_space<vmem>>, vector<4x48xf32>
    %38 = vector.extract_strided_slice %37 {offsets = [0, 0], sizes = [1, 32], strides = [1, 1]} : vector<4x48xf32> to vector<1x32xf32>
    %39 = vector.extract_strided_slice %37 {offsets = [1, 0], sizes = [1, 32], strides = [1, 1]} : vector<4x48xf32> to vector<1x32xf32>
    %40 = vector.extract_strided_slice %37 {offsets = [2, 0], sizes = [1, 48], strides = [1, 1]} : vector<4x48xf32> to vector<1x48xf32>
    %41 = vector.extract_strided_slice %37 {offsets = [3, 0], sizes = [1, 48], strides = [1, 1]} : vector<4x48xf32> to vector<1x48xf32>
    %cst_12 = arith.constant dense<0.000000e+00> : vector<12x16xf32>
    %42 = tpu.matmul %26, %0, %cst_12 {dimension_numbers = #tpu.dot_dimension_numbers<[1], [0], [0], [1], [0, 0, 1, 1], [], []>} : vector<12x8xf32>, vector<8x16xf32>, vector<12x16xf32> -> vector<12x16xf32>
    %cst_13 = arith.constant dense<0.000000e+00> : vector<12x16xf32>
    %43 = tpu.matmul %30, %0, %cst_13 {dimension_numbers = #tpu.dot_dimension_numbers<[1], [0], [0], [1], [0, 0, 1, 1], [], []>} : vector<12x8xf32>, vector<8x16xf32>, vector<12x16xf32> -> vector<12x16xf32>
    %cst_14 = arith.constant dense<0.000000e+00> : vector<12x16xf32>
    %44 = tpu.matmul %28, %0, %cst_14 {dimension_numbers = #tpu.dot_dimension_numbers<[1], [0], [0], [1], [0, 0, 1, 1], [], []>} : vector<12x8xf32>, vector<8x16xf32>, vector<12x16xf32> -> vector<12x16xf32>
    %cst_15 = arith.constant dense<0.000000e+00> : vector<12x16xf32>
    %45 = tpu.matmul %32, %0, %cst_15 {dimension_numbers = #tpu.dot_dimension_numbers<[1], [0], [0], [1], [0, 0, 1, 1], [], []>} : vector<12x8xf32>, vector<8x16xf32>, vector<12x16xf32> -> vector<12x16xf32>
    %46 = vector.extract_strided_slice %33 {offsets = [0, 0], sizes = [16, 32], strides = [1, 1]} : vector<32x32xf32> to vector<16x32xf32>
    %cst_16 = arith.constant dense<0.000000e+00> : vector<12x32xf32>
    %47 = tpu.matmul %42, %46, %cst_16 {dimension_numbers = #tpu.dot_dimension_numbers<[1], [0], [0], [1], [0, 0, 1, 1], [], []>} : vector<12x16xf32>, vector<16x32xf32>, vector<12x32xf32> -> vector<12x32xf32>
    %48 = vector.extract_strided_slice %33 {offsets = [16, 0], sizes = [16, 32], strides = [1, 1]} : vector<32x32xf32> to vector<16x32xf32>
    %cst_17 = arith.constant dense<0.000000e+00> : vector<12x32xf32>
    %49 = tpu.matmul %43, %48, %cst_17 {dimension_numbers = #tpu.dot_dimension_numbers<[1], [0], [0], [1], [0, 0, 1, 1], [], []>} : vector<12x16xf32>, vector<16x32xf32>, vector<12x32xf32> -> vector<12x32xf32>
    %50 = arith.addf %47, %49 : vector<12x32xf32>
    %51 = vector.extract_strided_slice %34 {offsets = [0, 0], sizes = [16, 32], strides = [1, 1]} : vector<32x32xf32> to vector<16x32xf32>
    %cst_18 = arith.constant dense<0.000000e+00> : vector<12x32xf32>
    %52 = tpu.matmul %44, %51, %cst_18 {dimension_numbers = #tpu.dot_dimension_numbers<[1], [0], [0], [1], [0, 0, 1, 1], [], []>} : vector<12x16xf32>, vector<16x32xf32>, vector<12x32xf32> -> vector<12x32xf32>
    %53 = arith.addf %50, %52 : vector<12x32xf32>
    %54 = vector.extract_strided_slice %34 {offsets = [16, 0], sizes = [16, 32], strides = [1, 1]} : vector<32x32xf32> to vector<16x32xf32>
    %cst_19 = arith.constant dense<0.000000e+00> : vector<12x32xf32>
    %55 = tpu.matmul %45, %54, %cst_19 {dimension_numbers = #tpu.dot_dimension_numbers<[1], [0], [0], [1], [0, 0, 1, 1], [], []>} : vector<12x16xf32>, vector<16x32xf32>, vector<12x32xf32> -> vector<12x32xf32>
    %56 = arith.addf %53, %55 : vector<12x32xf32>
    %57 = vector.broadcast %22 : vector<12x1xf32> to vector<12x32xf32>
    %58 = vector.broadcast %38 : vector<1x32xf32> to vector<12x32xf32>
    %59 = arith.mulf %57, %58 : vector<12x32xf32>
    %60 = arith.addf %56, %59 : vector<12x32xf32>
    %61 = vector.broadcast %24 : vector<12x1xf32> to vector<12x32xf32>
    %62 = vector.broadcast %39 : vector<1x32xf32> to vector<12x32xf32>
    %63 = arith.mulf %61, %62 : vector<12x32xf32>
    %64 = arith.addf %60, %63 : vector<12x32xf32>
    %cst_20 = arith.constant dense<0.000000e+00> : vector<8x32xf32>
    %65 = tpu.matmul %17, %64, %cst_20 {dimension_numbers = #tpu.dot_dimension_numbers<[1], [0], [0], [1], [0, 0, 1, 1], [], []>} : vector<8x12xf32>, vector<12x32xf32>, vector<8x32xf32> -> vector<8x32xf32>
    %cst_21 = arith.constant dense<0.000000e+00> : vector<8x48xf32>
    %66 = tpu.matmul %65, %35, %cst_21 {dimension_numbers = #tpu.dot_dimension_numbers<[1], [0], [0], [1], [0, 0, 1, 1], [], []>} : vector<8x32xf32>, vector<32x48xf32>, vector<8x48xf32> -> vector<8x48xf32>
    %67 = vector.broadcast %40 : vector<1x48xf32> to vector<8x48xf32>
    %68 = arith.addf %66, %67 : vector<8x48xf32>
    %cst_22 = arith.constant dense<0.000000e+00> : vector<8x48xf32>
    %69 = tpu.matmul %0, %36, %cst_22 {dimension_numbers = #tpu.dot_dimension_numbers<[1], [0], [0], [1], [0, 0, 1, 1], [], []>} : vector<8x16xf32>, vector<16x48xf32>, vector<8x48xf32> -> vector<8x48xf32>
    %70 = vector.broadcast %41 : vector<1x48xf32> to vector<8x48xf32>
    %71 = arith.addf %69, %70 : vector<8x48xf32>
    %72 = vector.extract_strided_slice %68 {offsets = [0, 0], sizes = [8, 16], strides = [1, 1]} : vector<8x48xf32> to vector<8x16xf32>
    %73 = vector.extract_strided_slice %71 {offsets = [0, 0], sizes = [8, 16], strides = [1, 1]} : vector<8x48xf32> to vector<8x16xf32>
    %74 = arith.addf %72, %73 : vector<8x16xf32>
    %75 = arith.negf %74 : vector<8x16xf32>
    %76 = math.exp %75 : vector<8x16xf32>
    %cst_23 = arith.constant 1.000000e+00 : f32
    %77 = vector.broadcast %cst_23 : f32 to vector<8x16xf32>
    %78 = arith.addf %77, %76 : vector<8x16xf32>
    %79 = arith.divf %77, %78 : vector<8x16xf32>
    %80 = vector.extract_strided_slice %68 {offsets = [0, 16], sizes = [8, 16], strides = [1, 1]} : vector<8x48xf32> to vector<8x16xf32>
    %81 = vector.extract_strided_slice %71 {offsets = [0, 16], sizes = [8, 16], strides = [1, 1]} : vector<8x48xf32> to vector<8x16xf32>
    %82 = arith.addf %80, %81 : vector<8x16xf32>
    %83 = arith.negf %82 : vector<8x16xf32>
    %84 = math.exp %83 : vector<8x16xf32>
    %cst_24 = arith.constant 1.000000e+00 : f32
    %85 = vector.broadcast %cst_24 : f32 to vector<8x16xf32>
    %86 = arith.addf %85, %84 : vector<8x16xf32>
    %87 = arith.divf %85, %86 : vector<8x16xf32>
    %88 = vector.extract_strided_slice %68 {offsets = [0, 32], sizes = [8, 16], strides = [1, 1]} : vector<8x48xf32> to vector<8x16xf32>
    %89 = vector.extract_strided_slice %71 {offsets = [0, 32], sizes = [8, 16], strides = [1, 1]} : vector<8x48xf32> to vector<8x16xf32>
    %90 = arith.mulf %79, %89 : vector<8x16xf32>
    %91 = arith.addf %88, %90 : vector<8x16xf32>
    %92 = math.tanh %91 : vector<8x16xf32>
    %cst_25 = arith.constant 1.000000e+00 : f32
    %93 = vector.broadcast %cst_25 : f32 to vector<8x16xf32>
    %94 = arith.subf %93, %87 : vector<8x16xf32>
    %95 = arith.mulf %94, %92 : vector<8x16xf32>
    %96 = arith.mulf %87, %0 : vector<8x16xf32>
    %97 = arith.addf %95, %96 : vector<8x16xf32>
    %c120 = arith.constant 120 : index
    %c0_26 = arith.constant 0 : index
    %98 = vector.load %arg4[%c120, %c0_26] : memref<240x48xf32, #tpu.memory_space<vmem>>, vector<32x32xf32>
    %c152 = arith.constant 152 : index
    %c0_27 = arith.constant 0 : index
    %99 = vector.load %arg4[%c152, %c0_27] : memref<240x48xf32, #tpu.memory_space<vmem>>, vector<32x32xf32>
    %c184 = arith.constant 184 : index
    %c0_28 = arith.constant 0 : index
    %100 = vector.load %arg4[%c184, %c0_28] : memref<240x48xf32, #tpu.memory_space<vmem>>, vector<32x48xf32>
    %c216 = arith.constant 216 : index
    %c0_29 = arith.constant 0 : index
    %101 = vector.load %arg4[%c216, %c0_29] : memref<240x48xf32, #tpu.memory_space<vmem>>, vector<16x48xf32>
    %c232 = arith.constant 232 : index
    %c0_30 = arith.constant 0 : index
    %102 = vector.load %arg4[%c232, %c0_30] : memref<240x48xf32, #tpu.memory_space<vmem>>, vector<4x48xf32>
    %103 = vector.extract_strided_slice %102 {offsets = [0, 0], sizes = [1, 32], strides = [1, 1]} : vector<4x48xf32> to vector<1x32xf32>
    %104 = vector.extract_strided_slice %102 {offsets = [1, 0], sizes = [1, 32], strides = [1, 1]} : vector<4x48xf32> to vector<1x32xf32>
    %105 = vector.extract_strided_slice %102 {offsets = [2, 0], sizes = [1, 48], strides = [1, 1]} : vector<4x48xf32> to vector<1x48xf32>
    %106 = vector.extract_strided_slice %102 {offsets = [3, 0], sizes = [1, 48], strides = [1, 1]} : vector<4x48xf32> to vector<1x48xf32>
    %cst_31 = arith.constant dense<0.000000e+00> : vector<12x16xf32>
    %107 = tpu.matmul %26, %97, %cst_31 {dimension_numbers = #tpu.dot_dimension_numbers<[1], [0], [0], [1], [0, 0, 1, 1], [], []>} : vector<12x8xf32>, vector<8x16xf32>, vector<12x16xf32> -> vector<12x16xf32>
    %cst_32 = arith.constant dense<0.000000e+00> : vector<12x16xf32>
    %108 = tpu.matmul %30, %97, %cst_32 {dimension_numbers = #tpu.dot_dimension_numbers<[1], [0], [0], [1], [0, 0, 1, 1], [], []>} : vector<12x8xf32>, vector<8x16xf32>, vector<12x16xf32> -> vector<12x16xf32>
    %cst_33 = arith.constant dense<0.000000e+00> : vector<12x16xf32>
    %109 = tpu.matmul %28, %97, %cst_33 {dimension_numbers = #tpu.dot_dimension_numbers<[1], [0], [0], [1], [0, 0, 1, 1], [], []>} : vector<12x8xf32>, vector<8x16xf32>, vector<12x16xf32> -> vector<12x16xf32>
    %cst_34 = arith.constant dense<0.000000e+00> : vector<12x16xf32>
    %110 = tpu.matmul %32, %97, %cst_34 {dimension_numbers = #tpu.dot_dimension_numbers<[1], [0], [0], [1], [0, 0, 1, 1], [], []>} : vector<12x8xf32>, vector<8x16xf32>, vector<12x16xf32> -> vector<12x16xf32>
    %111 = vector.extract_strided_slice %98 {offsets = [0, 0], sizes = [16, 32], strides = [1, 1]} : vector<32x32xf32> to vector<16x32xf32>
    %cst_35 = arith.constant dense<0.000000e+00> : vector<12x32xf32>
    %112 = tpu.matmul %107, %111, %cst_35 {dimension_numbers = #tpu.dot_dimension_numbers<[1], [0], [0], [1], [0, 0, 1, 1], [], []>} : vector<12x16xf32>, vector<16x32xf32>, vector<12x32xf32> -> vector<12x32xf32>
    %113 = vector.extract_strided_slice %98 {offsets = [16, 0], sizes = [16, 32], strides = [1, 1]} : vector<32x32xf32> to vector<16x32xf32>
    %cst_36 = arith.constant dense<0.000000e+00> : vector<12x32xf32>
    %114 = tpu.matmul %108, %113, %cst_36 {dimension_numbers = #tpu.dot_dimension_numbers<[1], [0], [0], [1], [0, 0, 1, 1], [], []>} : vector<12x16xf32>, vector<16x32xf32>, vector<12x32xf32> -> vector<12x32xf32>
    %115 = arith.addf %112, %114 : vector<12x32xf32>
    %116 = vector.extract_strided_slice %99 {offsets = [0, 0], sizes = [16, 32], strides = [1, 1]} : vector<32x32xf32> to vector<16x32xf32>
    %cst_37 = arith.constant dense<0.000000e+00> : vector<12x32xf32>
    %117 = tpu.matmul %109, %116, %cst_37 {dimension_numbers = #tpu.dot_dimension_numbers<[1], [0], [0], [1], [0, 0, 1, 1], [], []>} : vector<12x16xf32>, vector<16x32xf32>, vector<12x32xf32> -> vector<12x32xf32>
    %118 = arith.addf %115, %117 : vector<12x32xf32>
    %119 = vector.extract_strided_slice %99 {offsets = [16, 0], sizes = [16, 32], strides = [1, 1]} : vector<32x32xf32> to vector<16x32xf32>
    %cst_38 = arith.constant dense<0.000000e+00> : vector<12x32xf32>
    %120 = tpu.matmul %110, %119, %cst_38 {dimension_numbers = #tpu.dot_dimension_numbers<[1], [0], [0], [1], [0, 0, 1, 1], [], []>} : vector<12x16xf32>, vector<16x32xf32>, vector<12x32xf32> -> vector<12x32xf32>
    %121 = arith.addf %118, %120 : vector<12x32xf32>
    %122 = vector.broadcast %22 : vector<12x1xf32> to vector<12x32xf32>
    %123 = vector.broadcast %103 : vector<1x32xf32> to vector<12x32xf32>
    %124 = arith.mulf %122, %123 : vector<12x32xf32>
    %125 = arith.addf %121, %124 : vector<12x32xf32>
    %126 = vector.broadcast %24 : vector<12x1xf32> to vector<12x32xf32>
    %127 = vector.broadcast %104 : vector<1x32xf32> to vector<12x32xf32>
    %128 = arith.mulf %126, %127 : vector<12x32xf32>
    %129 = arith.addf %125, %128 : vector<12x32xf32>
    %cst_39 = arith.constant dense<0.000000e+00> : vector<8x32xf32>
    %130 = tpu.matmul %17, %129, %cst_39 {dimension_numbers = #tpu.dot_dimension_numbers<[1], [0], [0], [1], [0, 0, 1, 1], [], []>} : vector<8x12xf32>, vector<12x32xf32>, vector<8x32xf32> -> vector<8x32xf32>
    %cst_40 = arith.constant dense<0.000000e+00> : vector<8x48xf32>
    %131 = tpu.matmul %130, %100, %cst_40 {dimension_numbers = #tpu.dot_dimension_numbers<[1], [0], [0], [1], [0, 0, 1, 1], [], []>} : vector<8x32xf32>, vector<32x48xf32>, vector<8x48xf32> -> vector<8x48xf32>
    %132 = vector.broadcast %105 : vector<1x48xf32> to vector<8x48xf32>
    %133 = arith.addf %131, %132 : vector<8x48xf32>
    %cst_41 = arith.constant dense<0.000000e+00> : vector<8x48xf32>
    %134 = tpu.matmul %97, %101, %cst_41 {dimension_numbers = #tpu.dot_dimension_numbers<[1], [0], [0], [1], [0, 0, 1, 1], [], []>} : vector<8x16xf32>, vector<16x48xf32>, vector<8x48xf32> -> vector<8x48xf32>
    %135 = vector.broadcast %106 : vector<1x48xf32> to vector<8x48xf32>
    %136 = arith.addf %134, %135 : vector<8x48xf32>
    %137 = vector.extract_strided_slice %133 {offsets = [0, 0], sizes = [8, 16], strides = [1, 1]} : vector<8x48xf32> to vector<8x16xf32>
    %138 = vector.extract_strided_slice %136 {offsets = [0, 0], sizes = [8, 16], strides = [1, 1]} : vector<8x48xf32> to vector<8x16xf32>
    %139 = arith.addf %137, %138 : vector<8x16xf32>
    %140 = arith.negf %139 : vector<8x16xf32>
    %141 = math.exp %140 : vector<8x16xf32>
    %cst_42 = arith.constant 1.000000e+00 : f32
    %142 = vector.broadcast %cst_42 : f32 to vector<8x16xf32>
    %143 = arith.addf %142, %141 : vector<8x16xf32>
    %144 = arith.divf %142, %143 : vector<8x16xf32>
    %145 = vector.extract_strided_slice %133 {offsets = [0, 16], sizes = [8, 16], strides = [1, 1]} : vector<8x48xf32> to vector<8x16xf32>
    %146 = vector.extract_strided_slice %136 {offsets = [0, 16], sizes = [8, 16], strides = [1, 1]} : vector<8x48xf32> to vector<8x16xf32>
    %147 = arith.addf %145, %146 : vector<8x16xf32>
    %148 = arith.negf %147 : vector<8x16xf32>
    %149 = math.exp %148 : vector<8x16xf32>
    %cst_43 = arith.constant 1.000000e+00 : f32
    %150 = vector.broadcast %cst_43 : f32 to vector<8x16xf32>
    %151 = arith.addf %150, %149 : vector<8x16xf32>
    %152 = arith.divf %150, %151 : vector<8x16xf32>
    %153 = vector.extract_strided_slice %133 {offsets = [0, 32], sizes = [8, 16], strides = [1, 1]} : vector<8x48xf32> to vector<8x16xf32>
    %154 = vector.extract_strided_slice %136 {offsets = [0, 32], sizes = [8, 16], strides = [1, 1]} : vector<8x48xf32> to vector<8x16xf32>
    %155 = arith.mulf %144, %154 : vector<8x16xf32>
    %156 = arith.addf %153, %155 : vector<8x16xf32>
    %157 = math.tanh %156 : vector<8x16xf32>
    %cst_44 = arith.constant 1.000000e+00 : f32
    %158 = vector.broadcast %cst_44 : f32 to vector<8x16xf32>
    %159 = arith.subf %158, %152 : vector<8x16xf32>
    %160 = arith.mulf %159, %157 : vector<8x16xf32>
    %161 = arith.mulf %152, %97 : vector<8x16xf32>
    %162 = arith.addf %160, %161 : vector<8x16xf32>
    %163 = arith.mulf %162, %162 : vector<8x16xf32>
    %cst_45 = arith.constant dense<0.000000e+00> : vector<8xf32>
    %164 = vector.multi_reduction <add>, %163, %cst_45 [1] : vector<8x16xf32> to vector<8xf32>
    %165 = vector.shape_cast %164 : vector<8xf32> to vector<8x1xf32>
    %166 = math.sqrt %165 : vector<8x1xf32>
    %cst_46 = arith.constant 9.99999996E-13 : f32
    %167 = vector.broadcast %cst_46 : f32 to vector<8x1xf32>
    %168 = arith.maximumf %166, %167 : vector<8x1xf32>
    %169 = vector.broadcast %168 : vector<8x1xf32> to vector<8x16xf32>
    %170 = arith.divf %162, %169 : vector<8x16xf32>
    %c0_47 = arith.constant 0 : index
    %c0_48 = arith.constant 0 : index
    %171 = vector.load %arg3[%c0_47, %c0_48] : memref<2x8xf32, #tpu.memory_space<vmem>>, vector<2x8xf32>
    %c272 = arith.constant 272 : index
    %c0_49 = arith.constant 0 : index
    %172 = vector.load %arg5[%c272, %c0_49] : memref<288x32xf32, #tpu.memory_space<vmem>>, vector<10x32xf32>
    %173 = vector.extract_strided_slice %172 {offsets = [0, 0], sizes = [1, 16], strides = [1, 1]} : vector<10x32xf32> to vector<1x16xf32>
    %174 = vector.extract_strided_slice %172 {offsets = [1, 0], sizes = [1, 1], strides = [1, 1]} : vector<10x32xf32> to vector<1x1xf32>
    %175 = vector.extract_strided_slice %172 {offsets = [2, 0], sizes = [1, 16], strides = [1, 1]} : vector<10x32xf32> to vector<1x16xf32>
    %176 = vector.extract_strided_slice %172 {offsets = [3, 0], sizes = [1, 1], strides = [1, 1]} : vector<10x32xf32> to vector<1x1xf32>
    %177 = vector.extract_strided_slice %172 {offsets = [4, 0], sizes = [1, 16], strides = [1, 1]} : vector<10x32xf32> to vector<1x16xf32>
    %178 = vector.extract_strided_slice %172 {offsets = [5, 0], sizes = [1, 6], strides = [1, 1]} : vector<10x32xf32> to vector<1x6xf32>
    %179 = vector.extract_strided_slice %172 {offsets = [6, 0], sizes = [1, 32], strides = [1, 1]} : vector<10x32xf32> to vector<1x32xf32>
    %180 = vector.extract_strided_slice %172 {offsets = [7, 0], sizes = [1, 16], strides = [1, 1]} : vector<10x32xf32> to vector<1x16xf32>
    %181 = vector.extract_strided_slice %172 {offsets = [8, 0], sizes = [1, 32], strides = [1, 1]} : vector<10x32xf32> to vector<1x32xf32>
    %182 = vector.extract_strided_slice %172 {offsets = [9, 0], sizes = [1, 1], strides = [1, 1]} : vector<10x32xf32> to vector<1x1xf32>
    %c0_50 = arith.constant 0 : index
    %c0_51 = arith.constant 0 : index
    %183 = vector.load %arg5[%c0_50, %c0_51] : memref<288x32xf32, #tpu.memory_space<vmem>>, vector<16x16xf32>
    %cst_52 = arith.constant dense<0.000000e+00> : vector<8x16xf32>
    %184 = tpu.matmul %170, %183, %cst_52 {dimension_numbers = #tpu.dot_dimension_numbers<[1], [0], [0], [1], [0, 0, 1, 1], [], []>} : vector<8x16xf32>, vector<16x16xf32>, vector<8x16xf32> -> vector<8x16xf32>
    %185 = vector.broadcast %173 : vector<1x16xf32> to vector<8x16xf32>
    %186 = arith.addf %184, %185 : vector<8x16xf32>
    %c16 = arith.constant 16 : index
    %c0_53 = arith.constant 0 : index
    %187 = vector.load %arg5[%c16, %c0_53] : memref<288x32xf32, #tpu.memory_space<vmem>>, vector<16x1xf32>
    %cst_54 = arith.constant dense<0.000000e+00> : vector<8x1xf32>
    %188 = tpu.matmul %170, %187, %cst_54 {dimension_numbers = #tpu.dot_dimension_numbers<[1], [0], [0], [1], [0, 0, 1, 1], [], []>} : vector<8x16xf32>, vector<16x1xf32>, vector<8x1xf32> -> vector<8x1xf32>
    %189 = vector.broadcast %174 : vector<1x1xf32> to vector<8x1xf32>
    %190 = arith.addf %188, %189 : vector<8x1xf32>
    %191 = arith.negf %190 : vector<8x1xf32>
    %192 = math.exp %191 : vector<8x1xf32>
    %cst_55 = arith.constant 1.000000e+00 : f32
    %193 = vector.broadcast %cst_55 : f32 to vector<8x1xf32>
    %194 = arith.addf %193, %192 : vector<8x1xf32>
    %195 = arith.divf %193, %194 : vector<8x1xf32>
    %c32_56 = arith.constant 32 : index
    %c0_57 = arith.constant 0 : index
    %196 = vector.load %arg5[%c32_56, %c0_57] : memref<288x32xf32, #tpu.memory_space<vmem>>, vector<16x16xf32>
    %cst_58 = arith.constant dense<0.000000e+00> : vector<8x16xf32>
    %197 = tpu.matmul %170, %196, %cst_58 {dimension_numbers = #tpu.dot_dimension_numbers<[1], [0], [0], [1], [0, 0, 1, 1], [], []>} : vector<8x16xf32>, vector<16x16xf32>, vector<8x16xf32> -> vector<8x16xf32>
    %198 = vector.broadcast %175 : vector<1x16xf32> to vector<8x16xf32>
    %199 = arith.addf %197, %198 : vector<8x16xf32>
    %c48 = arith.constant 48 : index
    %c0_59 = arith.constant 0 : index
    %200 = vector.load %arg5[%c48, %c0_59] : memref<288x32xf32, #tpu.memory_space<vmem>>, vector<16x1xf32>
    %cst_60 = arith.constant dense<0.000000e+00> : vector<8x1xf32>
    %201 = tpu.matmul %170, %200, %cst_60 {dimension_numbers = #tpu.dot_dimension_numbers<[1], [0], [0], [1], [0, 0, 1, 1], [], []>} : vector<8x16xf32>, vector<16x1xf32>, vector<8x1xf32> -> vector<8x1xf32>
    %202 = vector.broadcast %176 : vector<1x1xf32> to vector<8x1xf32>
    %203 = arith.addf %201, %202 : vector<8x1xf32>
    %204 = arith.negf %203 : vector<8x1xf32>
    %205 = math.exp %204 : vector<8x1xf32>
    %cst_61 = arith.constant 1.000000e+00 : f32
    %206 = vector.broadcast %cst_61 : f32 to vector<8x1xf32>
    %207 = arith.addf %206, %205 : vector<8x1xf32>
    %208 = arith.divf %206, %207 : vector<8x1xf32>
    %209 = tpu.iota {dimensions = array<i32: 0>} : vector<2x8xi32>
    %210 = tpu.iota {dimensions = array<i32: 1>} : vector<2x8xi32>
    %c4_i32 = arith.constant 4 : i32
    %211 = vector.broadcast %c4_i32 : i32 to vector<2x8xi32>
    %212 = arith.muli %209, %211 : vector<2x8xi32>
    %213 = arith.cmpi sge, %210, %212 : vector<2x8xi32>
    %c1_i32 = arith.constant 1 : i32
    %214 = vector.broadcast %c1_i32 : i32 to vector<2x8xi32>
    %215 = arith.addi %209, %214 : vector<2x8xi32>
    %c4_i32_62 = arith.constant 4 : i32
    %216 = vector.broadcast %c4_i32_62 : i32 to vector<2x8xi32>
    %217 = arith.muli %215, %216 : vector<2x8xi32>
    %218 = arith.cmpi slt, %210, %217 : vector<2x8xi32>
    %219 = arith.andi %213, %218 : vector<2x8xi1>
    %220 = arith.extui %219 : vector<2x8xi1> to vector<2x8xi32>
    %221 = arith.sitofp %220 : vector<2x8xi32> to vector<2x8xf32>
    %222 = vector.broadcast %195 : vector<8x1xf32> to vector<8x16xf32>
    %223 = arith.mulf %186, %222 : vector<8x16xf32>
    %cst_63 = arith.constant dense<0.000000e+00> : vector<2x16xf32>
    %224 = tpu.matmul %221, %223, %cst_63 {dimension_numbers = #tpu.dot_dimension_numbers<[1], [0], [0], [1], [0, 0, 1, 1], [], []>} : vector<2x8xf32>, vector<8x16xf32>, vector<2x16xf32> -> vector<2x16xf32>
    %225 = arith.mulf %224, %224 : vector<2x16xf32>
    %cst_64 = arith.constant dense<0.000000e+00> : vector<2xf32>
    %226 = vector.multi_reduction <add>, %225, %cst_64 [1] : vector<2x16xf32> to vector<2xf32>
    %227 = vector.shape_cast %226 : vector<2xf32> to vector<2x1xf32>
    %228 = math.sqrt %227 : vector<2x1xf32>
    %cst_65 = arith.constant 9.99999996E-13 : f32
    %229 = vector.broadcast %cst_65 : f32 to vector<2x1xf32>
    %230 = arith.maximumf %228, %229 : vector<2x1xf32>
    %231 = vector.broadcast %230 : vector<2x1xf32> to vector<2x16xf32>
    %232 = arith.divf %224, %231 : vector<2x16xf32>
    %233 = vector.broadcast %208 : vector<8x1xf32> to vector<8x16xf32>
    %234 = arith.mulf %199, %233 : vector<8x16xf32>
    %cst_66 = arith.constant dense<0.000000e+00> : vector<2x16xf32>
    %235 = tpu.matmul %221, %234, %cst_66 {dimension_numbers = #tpu.dot_dimension_numbers<[1], [0], [0], [1], [0, 0, 1, 1], [], []>} : vector<2x8xf32>, vector<8x16xf32>, vector<2x16xf32> -> vector<2x16xf32>
    %236 = arith.mulf %235, %235 : vector<2x16xf32>
    %cst_67 = arith.constant dense<0.000000e+00> : vector<2xf32>
    %237 = vector.multi_reduction <add>, %236, %cst_67 [1] : vector<2x16xf32> to vector<2xf32>
    %238 = vector.shape_cast %237 : vector<2xf32> to vector<2x1xf32>
    %239 = math.sqrt %238 : vector<2x1xf32>
    %cst_68 = arith.constant 9.99999996E-13 : f32
    %240 = vector.broadcast %cst_68 : f32 to vector<2x1xf32>
    %241 = arith.maximumf %239, %240 : vector<2x1xf32>
    %242 = vector.broadcast %241 : vector<2x1xf32> to vector<2x16xf32>
    %243 = arith.divf %235, %242 : vector<2x16xf32>
    %c64_69 = arith.constant 64 : index
    %c0_70 = arith.constant 0 : index
    %244 = vector.load %arg5[%c64_69, %c0_70] : memref<288x32xf32, #tpu.memory_space<vmem>>, vector<16x16xf32>
    %cst_71 = arith.constant dense<0.000000e+00> : vector<2x16xf32>
    %245 = tpu.matmul %232, %244, %cst_71 {dimension_numbers = #tpu.dot_dimension_numbers<[1], [0], [0], [1], [0, 0, 1, 1], [], []>} : vector<2x16xf32>, vector<16x16xf32>, vector<2x16xf32> -> vector<2x16xf32>
    %c80 = arith.constant 80 : index
    %c0_72 = arith.constant 0 : index
    %246 = vector.load %arg5[%c80, %c0_72] : memref<288x32xf32, #tpu.memory_space<vmem>>, vector<8x16xf32>
    %cst_73 = arith.constant dense<0.000000e+00> : vector<2x16xf32>
    %247 = tpu.matmul %171, %246, %cst_73 {dimension_numbers = #tpu.dot_dimension_numbers<[1], [0], [0], [1], [0, 0, 1, 1], [], []>} : vector<2x8xf32>, vector<8x16xf32>, vector<2x16xf32> -> vector<2x16xf32>
    %248 = arith.addf %245, %247 : vector<2x16xf32>
    %249 = vector.broadcast %177 : vector<1x16xf32> to vector<2x16xf32>
    %250 = arith.addf %248, %249 : vector<2x16xf32>
    %cst_74 = arith.constant 0.000000e+00 : f32
    %251 = vector.broadcast %cst_74 : f32 to vector<2x16xf32>
    %252 = arith.cmpf oge, %250, %251 : vector<2x16xf32>
    %cst_75 = arith.constant 2.000000e-01 : f32
    %253 = vector.broadcast %cst_75 : f32 to vector<2x16xf32>
    %254 = arith.mulf %253, %250 : vector<2x16xf32>
    %255 = arith.select %252, %250, %254 : vector<2x16xi1>, vector<2x16xf32>
    %c88 = arith.constant 88 : index
    %c0_76 = arith.constant 0 : index
    %256 = vector.load %arg5[%c88, %c0_76] : memref<288x32xf32, #tpu.memory_space<vmem>>, vector<16x6xf32>
    %cst_77 = arith.constant dense<0.000000e+00> : vector<2x6xf32>
    %257 = tpu.matmul %255, %256, %cst_77 {dimension_numbers = #tpu.dot_dimension_numbers<[1], [0], [0], [1], [0, 0, 1, 1], [], []>} : vector<2x16xf32>, vector<16x6xf32>, vector<2x6xf32> -> vector<2x6xf32>
    %258 = vector.broadcast %178 : vector<1x6xf32> to vector<2x6xf32>
    %259 = arith.addf %257, %258 : vector<2x6xf32>
    %260 = tpu.iota {dimensions = array<i32: 1>} : vector<2x6xi32>
    %c0_i32 = arith.constant 0 : i32
    %261 = vector.broadcast %c0_i32 : i32 to vector<2x6xi32>
    %262 = arith.cmpi eq, %260, %261 : vector<2x6xi32>
    %c1_i32_78 = arith.constant 1 : i32
    %263 = vector.broadcast %c1_i32_78 : i32 to vector<2x6xi32>
    %264 = arith.cmpi eq, %260, %263 : vector<2x6xi32>
    %265 = arith.ori %262, %264 : vector<2x6xi1>
    %cst_79 = arith.constant -1.000000e+30 : f32
    %266 = vector.broadcast %cst_79 : f32 to vector<2x6xf32>
    %267 = arith.select %265, %266, %259 : vector<2x6xi1>, vector<2x6xf32>
    %cst_80 = arith.constant dense<0xFF800000> : vector<2xf32>
    %268 = vector.multi_reduction <maximumf>, %267, %cst_80 [1] : vector<2x6xf32> to vector<2xf32>
    %269 = vector.shape_cast %268 : vector<2xf32> to vector<2x1xf32>
    %270 = vector.broadcast %269 : vector<2x1xf32> to vector<2x6xf32>
    %271 = arith.subf %267, %270 : vector<2x6xf32>
    %272 = math.exp %271 : vector<2x6xf32>
    %cst_81 = arith.constant dense<0.000000e+00> : vector<2xf32>
    %273 = vector.multi_reduction <add>, %272, %cst_81 [1] : vector<2x6xf32> to vector<2xf32>
    %274 = vector.shape_cast %273 : vector<2xf32> to vector<2x1xf32>
    %275 = vector.broadcast %274 : vector<2x1xf32> to vector<2x6xf32>
    %276 = arith.divf %272, %275 : vector<2x6xf32>
    %277 = arith.sitofp %260 : vector<2x6xi32> to vector<2x6xf32>
    %278 = vector.broadcast %269 : vector<2x1xf32> to vector<2x6xf32>
    %279 = arith.cmpf oeq, %267, %278 : vector<2x6xf32>
    %cst_82 = arith.constant 6.000000e+00 : f32
    %280 = vector.broadcast %cst_82 : f32 to vector<2x6xf32>
    %281 = arith.select %279, %277, %280 : vector<2x6xi1>, vector<2x6xf32>
    %cst_83 = arith.constant dense<0x7F800000> : vector<2xf32>
    %282 = vector.multi_reduction <minimumf>, %281, %cst_83 [1] : vector<2x6xf32> to vector<2xf32>
    %283 = vector.shape_cast %282 : vector<2xf32> to vector<2x1xf32>
    %284 = vector.broadcast %283 : vector<2x1xf32> to vector<2x6xf32>
    %285 = arith.cmpf oeq, %277, %284 : vector<2x6xf32>
    %286 = arith.extui %285 : vector<2x6xi1> to vector<2x6xi32>
    %287 = arith.sitofp %286 : vector<2x6xi32> to vector<2x6xf32>
    %cst_84 = arith.constant 2.000000e+00 : f32
    %288 = vector.broadcast %cst_84 : f32 to vector<2x1xf32>
    %289 = arith.cmpf one, %283, %288 : vector<2x1xf32>
    %290 = arith.extui %289 : vector<2x1xi1> to vector<2x1xi32>
    %291 = arith.sitofp %290 : vector<2x1xi32> to vector<2x1xf32>
    %c104 = arith.constant 104 : index
    %c0_85 = arith.constant 0 : index
    %292 = vector.load %arg5[%c104, %c0_85] : memref<288x32xf32, #tpu.memory_space<vmem>>, vector<6x16xf32>
    %cst_86 = arith.constant dense<0.000000e+00> : vector<2x16xf32>
    %293 = tpu.matmul %287, %292, %cst_86 {dimension_numbers = #tpu.dot_dimension_numbers<[1], [0], [0], [1], [0, 0, 1, 1], [], []>} : vector<2x6xf32>, vector<6x16xf32>, vector<2x16xf32> -> vector<2x16xf32>
    %c112_87 = arith.constant 112 : index
    %c0_88 = arith.constant 0 : index
    %294 = vector.load %arg5[%c112_87, %c0_88] : memref<288x32xf32, #tpu.memory_space<vmem>>, vector<16x32xf32>
    %cst_89 = arith.constant dense<0.000000e+00> : vector<2x32xf32>
    %295 = tpu.matmul %293, %294, %cst_89 {dimension_numbers = #tpu.dot_dimension_numbers<[1], [0], [0], [1], [0, 0, 1, 1], [], []>} : vector<2x16xf32>, vector<16x32xf32>, vector<2x32xf32> -> vector<2x32xf32>
    %c128 = arith.constant 128 : index
    %c0_90 = arith.constant 0 : index
    %296 = vector.load %arg5[%c128, %c0_90] : memref<288x32xf32, #tpu.memory_space<vmem>>, vector<16x32xf32>
    %cst_91 = arith.constant dense<0.000000e+00> : vector<2x32xf32>
    %297 = tpu.matmul %243, %296, %cst_91 {dimension_numbers = #tpu.dot_dimension_numbers<[1], [0], [0], [1], [0, 0, 1, 1], [], []>} : vector<2x16xf32>, vector<16x32xf32>, vector<2x32xf32> -> vector<2x32xf32>
    %298 = arith.addf %295, %297 : vector<2x32xf32>
    %c144 = arith.constant 144 : index
    %c0_92 = arith.constant 0 : index
    %299 = vector.load %arg5[%c144, %c0_92] : memref<288x32xf32, #tpu.memory_space<vmem>>, vector<8x32xf32>
    %cst_93 = arith.constant dense<0.000000e+00> : vector<2x32xf32>
    %300 = tpu.matmul %171, %299, %cst_93 {dimension_numbers = #tpu.dot_dimension_numbers<[1], [0], [0], [1], [0, 0, 1, 1], [], []>} : vector<2x8xf32>, vector<8x32xf32>, vector<2x32xf32> -> vector<2x32xf32>
    %301 = arith.addf %298, %300 : vector<2x32xf32>
    %302 = vector.broadcast %179 : vector<1x32xf32> to vector<2x32xf32>
    %303 = arith.addf %301, %302 : vector<2x32xf32>
    %cst_94 = arith.constant 0.000000e+00 : f32
    %304 = vector.broadcast %cst_94 : f32 to vector<2x32xf32>
    %305 = arith.cmpf oge, %303, %304 : vector<2x32xf32>
    %cst_95 = arith.constant 2.000000e-01 : f32
    %306 = vector.broadcast %cst_95 : f32 to vector<2x32xf32>
    %307 = arith.mulf %306, %303 : vector<2x32xf32>
    %308 = arith.select %305, %303, %307 : vector<2x32xi1>, vector<2x32xf32>
    %c152_96 = arith.constant 152 : index
    %c0_97 = arith.constant 0 : index
    %309 = vector.load %arg5[%c152_96, %c0_97] : memref<288x32xf32, #tpu.memory_space<vmem>>, vector<32x16xf32>
    %cst_98 = arith.constant dense<0.000000e+00> : vector<2x16xf32>
    %310 = tpu.matmul %308, %309, %cst_98 {dimension_numbers = #tpu.dot_dimension_numbers<[1], [0], [0], [1], [0, 0, 1, 1], [], []>} : vector<2x32xf32>, vector<32x16xf32>, vector<2x16xf32> -> vector<2x16xf32>
    %311 = vector.broadcast %180 : vector<1x16xf32> to vector<2x16xf32>
    %312 = arith.addf %310, %311 : vector<2x16xf32>
    %313 = arith.mulf %312, %312 : vector<2x16xf32>
    %cst_99 = arith.constant dense<0.000000e+00> : vector<2xf32>
    %314 = vector.multi_reduction <add>, %313, %cst_99 [1] : vector<2x16xf32> to vector<2xf32>
    %315 = vector.shape_cast %314 : vector<2xf32> to vector<2x1xf32>
    %316 = math.sqrt %315 : vector<2x1xf32>
    %cst_100 = arith.constant 9.99999996E-13 : f32
    %317 = vector.broadcast %cst_100 : f32 to vector<2x1xf32>
    %318 = arith.maximumf %316, %317 : vector<2x1xf32>
    %319 = vector.broadcast %318 : vector<2x1xf32> to vector<2x16xf32>
    %320 = arith.divf %312, %319 : vector<2x16xf32>
    %321 = tpu.iota {dimensions = array<i32: 0>} : vector<8x2xi32>
    %322 = tpu.iota {dimensions = array<i32: 1>} : vector<8x2xi32>
    %c4_i32_101 = arith.constant 4 : i32
    %323 = vector.broadcast %c4_i32_101 : i32 to vector<8x2xi32>
    %324 = arith.muli %322, %323 : vector<8x2xi32>
    %325 = arith.cmpi sge, %321, %324 : vector<8x2xi32>
    %c1_i32_102 = arith.constant 1 : i32
    %326 = vector.broadcast %c1_i32_102 : i32 to vector<8x2xi32>
    %327 = arith.addi %322, %326 : vector<8x2xi32>
    %c4_i32_103 = arith.constant 4 : i32
    %328 = vector.broadcast %c4_i32_103 : i32 to vector<8x2xi32>
    %329 = arith.muli %327, %328 : vector<8x2xi32>
    %330 = arith.cmpi slt, %321, %329 : vector<8x2xi32>
    %331 = arith.andi %325, %330 : vector<8x2xi1>
    %332 = arith.extui %331 : vector<8x2xi1> to vector<8x2xi32>
    %333 = arith.sitofp %332 : vector<8x2xi32> to vector<8x2xf32>
    %cst_104 = arith.constant 0.000000e+00 : f32
    %334 = vector.broadcast %cst_104 : f32 to vector<8x2xf32>
    %c0_i32_105 = arith.constant 0 : i32
    %335 = vector.broadcast %c0_i32_105 : i32 to vector<8x2xi32>
    %336 = arith.addi %335, %322 : vector<8x2xi32>
    %337 = arith.cmpi eq, %321, %336 : vector<8x2xi32>
    %338 = arith.extui %337 : vector<8x2xi1> to vector<8x2xi32>
    %339 = arith.sitofp %338 : vector<8x2xi32> to vector<8x2xf32>
    %340 = arith.addf %334, %339 : vector<8x2xf32>
    %c2_i32 = arith.constant 2 : i32
    %341 = vector.broadcast %c2_i32 : i32 to vector<8x2xi32>
    %342 = arith.addi %341, %322 : vector<8x2xi32>
    %343 = arith.cmpi eq, %321, %342 : vector<8x2xi32>
    %344 = arith.extui %343 : vector<8x2xi1> to vector<8x2xi32>
    %345 = arith.sitofp %344 : vector<8x2xi32> to vector<8x2xf32>
    %346 = arith.addf %340, %345 : vector<8x2xf32>
    %c4_i32_106 = arith.constant 4 : i32
    %347 = vector.broadcast %c4_i32_106 : i32 to vector<8x2xi32>
    %348 = arith.addi %347, %322 : vector<8x2xi32>
    %349 = arith.cmpi eq, %321, %348 : vector<8x2xi32>
    %350 = arith.extui %349 : vector<8x2xi1> to vector<8x2xi32>
    %351 = arith.sitofp %350 : vector<8x2xi32> to vector<8x2xf32>
    %352 = arith.addf %346, %351 : vector<8x2xf32>
    %c6_i32_107 = arith.constant 6 : i32
    %353 = vector.broadcast %c6_i32_107 : i32 to vector<8x2xi32>
    %354 = arith.addi %353, %322 : vector<8x2xi32>
    %355 = arith.cmpi eq, %321, %354 : vector<8x2xi32>
    %356 = arith.extui %355 : vector<8x2xi1> to vector<8x2xi32>
    %357 = arith.sitofp %356 : vector<8x2xi32> to vector<8x2xf32>
    %358 = arith.addf %352, %357 : vector<8x2xf32>
    %c184_108 = arith.constant 184 : index
    %c0_109 = arith.constant 0 : index
    %359 = vector.load %arg5[%c184_108, %c0_109] : memref<288x32xf32, #tpu.memory_space<vmem>>, vector<16x32xf32>
    %cst_110 = arith.constant dense<0.000000e+00> : vector<8x32xf32>
    %360 = tpu.matmul %170, %359, %cst_110 {dimension_numbers = #tpu.dot_dimension_numbers<[1], [0], [0], [1], [0, 0, 1, 1], [], []>} : vector<8x16xf32>, vector<16x32xf32>, vector<8x32xf32> -> vector<8x32xf32>
    %c200 = arith.constant 200 : index
    %c0_111 = arith.constant 0 : index
    %361 = vector.load %arg5[%c200, %c0_111] : memref<288x32xf32, #tpu.memory_space<vmem>>, vector<16x32xf32>
    %cst_112 = arith.constant dense<0.000000e+00> : vector<2x32xf32>
    %362 = tpu.matmul %320, %361, %cst_112 {dimension_numbers = #tpu.dot_dimension_numbers<[1], [0], [0], [1], [0, 0, 1, 1], [], []>} : vector<2x16xf32>, vector<16x32xf32>, vector<2x32xf32> -> vector<2x32xf32>
    %cst_113 = arith.constant dense<0.000000e+00> : vector<8x32xf32>
    %363 = tpu.matmul %333, %362, %cst_113 {dimension_numbers = #tpu.dot_dimension_numbers<[1], [0], [0], [1], [0, 0, 1, 1], [], []>} : vector<8x2xf32>, vector<2x32xf32>, vector<8x32xf32> -> vector<8x32xf32>
    %364 = arith.addf %360, %363 : vector<8x32xf32>
    %c216_114 = arith.constant 216 : index
    %c0_115 = arith.constant 0 : index
    %365 = vector.load %arg5[%c216_114, %c0_115] : memref<288x32xf32, #tpu.memory_space<vmem>>, vector<16x32xf32>
    %cst_116 = arith.constant dense<0.000000e+00> : vector<2x32xf32>
    %366 = tpu.matmul %232, %365, %cst_116 {dimension_numbers = #tpu.dot_dimension_numbers<[1], [0], [0], [1], [0, 0, 1, 1], [], []>} : vector<2x16xf32>, vector<16x32xf32>, vector<2x32xf32> -> vector<2x32xf32>
    %c232_117 = arith.constant 232 : index
    %c0_118 = arith.constant 0 : index
    %367 = vector.load %arg5[%c232_117, %c0_118] : memref<288x32xf32, #tpu.memory_space<vmem>>, vector<8x32xf32>
    %cst_119 = arith.constant dense<0.000000e+00> : vector<2x32xf32>
    %368 = tpu.matmul %171, %367, %cst_119 {dimension_numbers = #tpu.dot_dimension_numbers<[1], [0], [0], [1], [0, 0, 1, 1], [], []>} : vector<2x8xf32>, vector<8x32xf32>, vector<2x32xf32> -> vector<2x32xf32>
    %369 = arith.addf %366, %368 : vector<2x32xf32>
    %cst_120 = arith.constant dense<0.000000e+00> : vector<8x32xf32>
    %370 = tpu.matmul %358, %369, %cst_120 {dimension_numbers = #tpu.dot_dimension_numbers<[1], [0], [0], [1], [0, 0, 1, 1], [], []>} : vector<8x2xf32>, vector<2x32xf32>, vector<8x32xf32> -> vector<8x32xf32>
    %371 = arith.addf %364, %370 : vector<8x32xf32>
    %372 = vector.broadcast %181 : vector<1x32xf32> to vector<8x32xf32>
    %373 = arith.addf %371, %372 : vector<8x32xf32>
    %cst_121 = arith.constant 0.000000e+00 : f32
    %374 = vector.broadcast %cst_121 : f32 to vector<8x32xf32>
    %375 = arith.cmpf oge, %373, %374 : vector<8x32xf32>
    %cst_122 = arith.constant 2.000000e-01 : f32
    %376 = vector.broadcast %cst_122 : f32 to vector<8x32xf32>
    %377 = arith.mulf %376, %373 : vector<8x32xf32>
    %378 = arith.select %375, %373, %377 : vector<8x32xi1>, vector<8x32xf32>
    %c240 = arith.constant 240 : index
    %c0_123 = arith.constant 0 : index
    %379 = vector.load %arg5[%c240, %c0_123] : memref<288x32xf32, #tpu.memory_space<vmem>>, vector<32x1xf32>
    %cst_124 = arith.constant dense<0.000000e+00> : vector<8x1xf32>
    %380 = tpu.matmul %378, %379, %cst_124 {dimension_numbers = #tpu.dot_dimension_numbers<[1], [0], [0], [1], [0, 0, 1, 1], [], []>} : vector<8x32xf32>, vector<32x1xf32>, vector<8x1xf32> -> vector<8x1xf32>
    %381 = vector.broadcast %182 : vector<1x1xf32> to vector<8x1xf32>
    %382 = arith.addf %380, %381 : vector<8x1xf32>
    %383 = arith.negf %382 : vector<8x1xf32>
    %384 = math.exp %383 : vector<8x1xf32>
    %cst_125 = arith.constant 1.000000e+00 : f32
    %385 = vector.broadcast %cst_125 : f32 to vector<8x1xf32>
    %386 = arith.addf %385, %384 : vector<8x1xf32>
    %387 = arith.divf %385, %386 : vector<8x1xf32>
    %c0_126 = arith.constant 0 : index
    %c0_127 = arith.constant 0 : index
    %388 = vector.load %arg7[%c0_126, %c0_127] : memref<2x13xf32, #tpu.memory_space<vmem>>, vector<2x6xf32>
    tpu.vector_store %arg7[%c0_126, %c0_127], %287 {strides = array<i32>} : memref<2x13xf32, #tpu.memory_space<vmem>>, vector<2x6xf32>,
    %c0_128 = arith.constant 0 : index
    %c6 = arith.constant 6 : index
    %389 = vector.load %arg7[%c0_128, %c6] : memref<2x13xf32, #tpu.memory_space<vmem>>, vector<2x6xf32>
    tpu.vector_store %arg7[%c0_128, %c6], %276 {strides = array<i32>} : memref<2x13xf32, #tpu.memory_space<vmem>>, vector<2x6xf32>,
    %c0_129 = arith.constant 0 : index
    %c12 = arith.constant 12 : index
    %390 = vector.load %arg7[%c0_129, %c12] : memref<2x13xf32, #tpu.memory_space<vmem>>, vector<2x1xf32>
    tpu.vector_store %arg7[%c0_129, %c12], %291 {strides = array<i32>} : memref<2x13xf32, #tpu.memory_space<vmem>>, vector<2x1xf32>,
    %c0_130 = arith.constant 0 : index
    %c0_131 = arith.constant 0 : index
    %391 = vector.load %arg8[%c0_130, %c0_131] : memref<8x1xf32, #tpu.memory_space<vmem>>, vector<8x1xf32>
    tpu.vector_store %arg8[%c0_130, %c0_131], %387 {strides = array<i32>} : memref<8x1xf32, #tpu.memory_space<vmem>>, vector<8x1xf32>,
    %392 = vector.extract_strided_slice %170 {offsets = [0, 0], sizes = [4, 16], strides = [1, 1]} : vector<8x16xf32> to vector<4x16xf32>
    %c0_132 = arith.constant 0 : index
    %c0_133 = arith.constant 0 : index
    %c0_134 = arith.constant 0 : index
    %393 = vector.load %arg6[%c0_132, %c0_133, %c0_134] : memref<2x5x16xf32, #tpu.memory_space<vmem>>, vector<1x4x16xf32>
    %394 = vector.shape_cast %393 : vector<1x4x16xf32> to vector<4x16xf32>
    %395 = vector.shape_cast %392 : vector<4x16xf32> to vector<1x4x16xf32>
    tpu.vector_store %arg6[%c0_132, %c0_133, %c0_134], %395 {strides = array<i32>} : memref<2x5x16xf32, #tpu.memory_space<vmem>>, vector<1x4x16xf32>,
    %396 = vector.extract_strided_slice %320 {offsets = [0, 0], sizes = [1, 16], strides = [1, 1]} : vector<2x16xf32> to vector<1x16xf32>
    %c0_135 = arith.constant 0 : index
    %c4 = arith.constant 4 : index
    %c0_136 = arith.constant 0 : index
    %397 = vector.load %arg6[%c0_135, %c4, %c0_136] : memref<2x5x16xf32, #tpu.memory_space<vmem>>, vector<1x1x16xf32>
    %398 = vector.shape_cast %397 : vector<1x1x16xf32> to vector<1x16xf32>
    %399 = vector.shape_cast %396 : vector<1x16xf32> to vector<1x1x16xf32>
    tpu.vector_store %arg6[%c0_135, %c4, %c0_136], %399 {strides = array<i32>} : memref<2x5x16xf32, #tpu.memory_space<vmem>>, vector<1x1x16xf32>,
    %400 = vector.extract_strided_slice %170 {offsets = [4, 0], sizes = [4, 16], strides = [1, 1]} : vector<8x16xf32> to vector<4x16xf32>
    %c1_137 = arith.constant 1 : index
    %c0_138 = arith.constant 0 : index
    %c0_139 = arith.constant 0 : index
    %401 = vector.load %arg6[%c1_137, %c0_138, %c0_139] : memref<2x5x16xf32, #tpu.memory_space<vmem>>, vector<1x4x16xf32>
    %402 = vector.shape_cast %401 : vector<1x4x16xf32> to vector<4x16xf32>
    %403 = vector.shape_cast %400 : vector<4x16xf32> to vector<1x4x16xf32>
    tpu.vector_store %arg6[%c1_137, %c0_138, %c0_139], %403 {strides = array<i32>} : memref<2x5x16xf32, #tpu.memory_space<vmem>>, vector<1x4x16xf32>,
    %404 = vector.extract_strided_slice %320 {offsets = [1, 0], sizes = [1, 16], strides = [1, 1]} : vector<2x16xf32> to vector<1x16xf32>
    %c1_140 = arith.constant 1 : index
    %c4_141 = arith.constant 4 : index
    %c0_142 = arith.constant 0 : index
    %405 = vector.load %arg6[%c1_140, %c4_141, %c0_142] : memref<2x5x16xf32, #tpu.memory_space<vmem>>, vector<1x1x16xf32>
    %406 = vector.shape_cast %405 : vector<1x1x16xf32> to vector<1x16xf32>
    %407 = vector.shape_cast %404 : vector<1x16xf32> to vector<1x1x16xf32>
    tpu.vector_store %arg6[%c1_140, %c4_141, %c0_142], %407 {strides = array<i32>} : memref<2x5x16xf32, #tpu.memory_space<vmem>>, vector<1x1x16xf32>,
    return
  }
}

</mosaic_0001>

<bundles_post_ra>
// kernel: step_generator_forward.1
= control target key start
LH: loop header
LB: loop body
LE: loop exit
PB: predicated region body
PF: predicated region fallthrough
CT: control target
= control target key end

     0   :  { %v4429_v0 = vmov 1   ;;  %v4430_v1 = vmov 0   ;;  %v30_v5 = vlaneseq  ;;  %v4431_v10 = vmov 0.0   ;;  %s4435_s16 = smov 96   ;;  %s4436_s17 = smov 32   ;;  %s5083_s0 = inlined_call_operand.vmem [shape: s32[12,2], index: 0, kind: input, shape index: {}]   ;;  %s5084_s2 = inlined_call_operand.vmem [shape: f32[8,16], index: 2, kind: input, shape index: {}]   ;;  %s5085_s4 = inlined_call_operand.vmem [shape: f32[240,48], index: 4, kind: input, shape index: {}]   ;;  %s5086_s1 = inlined_call_operand.vmem [shape: s32[1,12], index: 1, kind: input, shape index: {}]   ;;  %s5087_s5 = inlined_call_operand.vmem [shape: f32[288,32], index: 5, kind: input, shape index: {}]   ;;  %s5088_s6 = inlined_call_operand.vmem [shape: f32[2,5,16], index: 6, kind: output, shape index: {0}]   ;;  %s5089_s3 = inlined_call_operand.vmem [shape: f32[2,8], index: 3, kind: input, shape index: {}]   ;;  %s5090_s7 = inlined_call_operand.vmem [shape: f32[2,13], index: 7, kind: output, shape index: {1}]   ;;  %s5091_s8 = inlined_call_operand.vmem [shape: f32[8,1], index: 8, kind: output, shape index: {2}]  }
   0x1   :  { %4382 = vset.pattern.permute.xlu0 %v4429_v0  ;;  %4383 = vset.pattern.permute.xlu1 %v4430_v1  ;;  %v27_v2 = vld [vmem:[%s5083_s0] sm:$0xff]  ;;  %v28_v3 = vld [vmem:[%s5083_s0 + $0x8] sm:$0xf]  ;;  %vm97_vm3 = vcmask 64512   ;;  %v84_v19 = vld [vmem:[%s5085_s4 + $0x10] sm:$0xff]  ;;  %vm422_vm6 = vcmask 130048  }
   0x2   :  { %33 = vperm.xlu1 %4383, %v27_v2   ;;  %45 = vperm.xlu0 %4382, %v27_v2   ;;  %v4494_v4 = vld [vmem:[%s5084_s2] sm:$0xff]  ;;  %v4502_v6 = vshrl.u32 %v30_v5, 7  ;;  %v4504_v7 = vand.u32 127, %v30_v5  ;;  %v85_v20 = vld [vmem:[%s5085_s4 + $0x18] sm:$0xff]  ;;  %v83_v29 = vld [vmem:[%s5085_s4 + $0x8] sm:$0xff]  ;;  %v4432_v45 = vmov 0.0|0.0  }
   0x3   :  { %3969 = vmatprep.subr.mxu0 %v4494_v4  ;;  %3974 = vmatprep.subr.mxu1 %v4494_v4  ;;  %v4254_v27 = vpack.c.bf16 %v85_v20, %v84_v19  ;;  %v82_v28 = vld [vmem:[%s5085_s4] sm:$0xff]  ;;  %v87_v32 = vld [vmem:[%s5085_s4 + $0x28] sm:$0xff]  ;;  %v88_v42 = vld [vmem:[%s5085_s4 + $0x30] sm:$0xff]  ;;  %vm4433_vm7 = vmmov 0   ;;  %vm771_vm8 = vcmask 1043456   ;;  %vm4434_vm9 = vmmov 1  }
   0x4   :  { %3970 = vmatpush3.msra.mxu0 %v4494_v4  ;;  %3975 = vmatpush3.msra.mxu1 %v4494_v4  ;;  %vm66_vm0 = vcmp.lt.s32.totalorder %v4502_v6, 6  ;;  %v4258_v30 = vpack.c.bf16 %v83_v29, %v82_v28  ;;  %v86_v31 = vld [vmem:[%s5085_s4 + $0x20] sm:$0xff]  ;;  %v89_v43 = vld [vmem:[%s5085_s4 + $0x38] sm:$0xff]  ;;  %v4595_v46 = vsub.s32 0, %v4502_v6  ;;  %v96_v47 = vld [vmem:[%s5085_s4 + $0x70] sm:$0xf] }
   0x5   :  { %3979 = vmatprep.subr.mxu0 %v4494_v4  ;;  %3984 = vmatprep.subr.mxu1 %v4494_v4  ;;  %v4508_v11 = vsel %vm66_vm0, 1.0, %v4431_v10  ;;  %v4262_v37 = vpack.c.bf16 %v87_v32, %v86_v31  ;;  %v4266_v44 = vpack.c.bf16 %v89_v43, %v88_v42  ;;  %v4601_v48 = vsub.s32 1, %v4502_v6  ;;  %v3750_v58 = vld [vmem:[%s5086_s1] ss:$0 sm:$0xff]  ;;  %vm4610_vm10 = vmpackc.low %vm771_vm8, %vm4434_vm9  ;;  %v91_v63 = vld [vmem:[%s5085_s4 + $0x48] sm:$0xff]  ;;  %s4437_s18 = smov 16  }
   0x6   :  { %36 = vperm.xlu1 %4383, %v28_v3   ;;  %48 = vperm.xlu0 %4382, %v28_v3   ;;  %v4519_v16 = vsub.f32 1.0, %v4508_v11  ;;  %v754_v49 = vrot.slane %v96_v47, %v4595_v46  ;;  %vm62_vm11 = vcmp.eq.s32.totalorder %v4502_v6, %v3750_v58  ;;  %v90_v62 = vld [vmem:[%s5085_s4 + $0x40] sm:$0xff]  ;;  %vm767_vm12 = vcmask 97280   ;;  %v92_v3 = vld [vmem:[%s5085_s4 + $0x50] sm:$0xff]  ;;  %v93_v5 = vld [vmem:[%s5085_s4 + $0x58] sm:$0xff]  ;;  %s4438_s19 = smov 112  }
   0x7   :  { %v762_v50 = vrot.slane %v96_v47, %v4601_v48  ;;  %v4275_v2 = vpack.c.bf16 %v91_v63, %v90_v62  ;;  %vm849_vm13 = vcmask 261120   ;;  %v4658_v31 = vsub.s32 2, %v4502_v6  ;;  %v1041_v61 = vld [vmem:[%s5085_s4 + $0xd8] sm:$0xff]  ;;  %s4439_s2 = smov 6  }
   0x8   :  { %v756_v51 = vmul.f32 0.0, %v754_v49  ;;  %v755_v52 = vmul.f32 %v4508_v11, %v754_v49  ;;  %vm3725_vm0 = vcmask 125952   ;;  %vm2374_vm8 = vcmask 123904  }
   0x9   :  { %v763_v54 = vmul.f32 %v762_v50, %v4519_v16  ;;  %v848_v32 = vrot.slane %v96_v47, %v4658_v31 }
   0xa   :  { %4384 = vset.pattern.permute.xlu0 %v4430_v1  ;;  %v4624_v1 = vsel %vm62_vm11, 1.0, %v4431_v10 }
  0x81   :  { %v34_v8 = vpop.permute.xlu1 %33  ;;  %v46_v9 = vpop.permute.xlu0 %45 }
  0x82   :  { %vm38_vm1 = vcmp.eq.s32.totalorder %v4504_v7, %v34_v8  ;;  %vm50_vm2 = vcmp.eq.s32.totalorder %v4504_v7, %v46_v9  ;;  %v4278_v8 = vpack.c.bf16 %v93_v5, %v92_v3  ;;  %v94_v9 = vld [vmem:[%s5085_s4 + $0x60] sm:$0xff]  ;;  %v1043_v5 = vld [vmem:[%s5085_s4 + $0xe8] sm:$0xf] }
  0x83   :  { %v3746_v12 = vsel %vm38_vm1, 1.0, %v4431_v10  ;;  %v3748_v13 = vsel %vm50_vm2, 1.0, %v4431_v10  ;;  %vm3730_vm1 = vcmask 130052  }
  0x84   :  { %v4515_v14 = vmul.f32 %v4508_v11, %v3748_v13  ;;  %v74_v15 = vmul.f32 %v4508_v11, %v3746_v12  ;;  %v4539_v23 = vmul.f32 %v3746_v12, %v4519_v16  ;;  %v4548_v26 = vmul.f32 %v3748_v13, %v4519_v16  ;;  %v95_v12 = vld [vmem:[%s5085_s4 + $0x68] sm:$0xff] }
  0x85   :  { %v37_v17 = vpop.permute.xlu1 %36  ;;  %v49_v18 = vpop.permute.xlu0 %48  ;;  %v4281_v13 = vpack.c.bf16 %v95_v12, %v94_v9  ;;  %v1687_v9 = vrot.slane %v1043_v5, %v4601_v48 }
  0x86   :  { %vm39_vm4 = vcmp.eq.s32.totalorder %v4504_v7, %v37_v17  ;;  %vm51_vm5 = vcmp.eq.s32.totalorder %v4504_v7, %v49_v18  ;;  %3976 = vmatprep.mubr.msk.f32.mxu1 %vm97_vm3, %v4515_v14  ;;  %3971 = vmatprep.mubr.msk.f32.mxu0 %vm97_vm3, %v74_v15  ;;  %v4653_v18 = vsub.s32 3, %v4502_v6 }
  0x87   :  { %v4533_v21 = vsel %vm39_vm4, 1.0, %v4431_v10  ;;  %v4536_v22 = vsel %vm51_vm5, 1.0, %v4431_v10 }
  0x88   :  { %v4542_v24 = vmul.f32 0.0, %v4533_v21  ;;  %v4545_v25 = vmul.f32 0.0, %v4536_v22 }
  0x8a   :  { %3972 = vmatmul.mubr.msk.f32.vlgmr.msra.gmra.mrb[0].mxu0 %vm97_vm3, %v4542_v24  ;;  %3977 = vmatmul.mubr.msk.f32.vlgmr.msra.gmra.mrb[0].mxu1 %vm97_vm3, %v4545_v25 }
  0x8b   :  { %3986 = vmatprep.mubr.msk.f32.mxu1 %vm97_vm3, %v4548_v26  ;;  %3980 = vmatpush3.msra.mxu0 %v4494_v4 }
  0x8c   :  { %3981 = vmatprep.mubr.msk.f32.mxu0 %vm97_vm3, %v4539_v23  ;;  %3985 = vmatpush3.msra.mxu1 %v4494_v4 }
  0x8d   :  { %4255 = vmatprep.subr.bf16.mxu0 %v4254_v27  ;;  %4270 = vmatprep.subr.bf16.mxu1 %v4432_v45 }
  0x8e   :  { %3982 = vmatmul.mubr.msk.f32.vlgmr.msra.gmra.mrb[2].mxu0 %vm97_vm3, %v4533_v21  ;;  %3987 = vmatmul.mubr.msk.f32.vlgmr.msra.gmra.mrb[2].mxu1 %vm97_vm3, %v4536_v22 }
  0x8f   :  { %4257 = vmatpush3.bf16.msra.mxu0 %v4254_v27  ;;  %4021 = vmatprep.mubr.msk.f32.mxu1 %vm4433_vm7, %v4431_v10  ;;  %v926_v27 = vrot.slane %v96_v47, %v4653_v18 }
  0x90   :  { %4259 = vmatprep.subr.bf16.mxu0 %v4258_v30 }
 0x15d   :  { %v3978_v33 = vpop.f32.mrb[0].mxu1  ;;  %v3973_v34 = vpop.f32.mrb[0].mxu0 }
 0x15e   :  { %v251_v35 = vpop.f32.mrb[1].mxu1  ;;  %v170_v36 = vpop.f32.mrb[1].mxu0 }
 0x15f   :  { %3993 = vmatprep.mubr.msk.f32.mxu0 %vm422_vm6, %v251_v35 }
 0x160   :  { %3994 = vmatmul.mubr.msk.f32.vlgmr.msra.gmra.mrb[4].mxu0 %vm422_vm6, %v3978_v33 }
 0x161   :  { %v3983_v38 = vpop.f32.mrb[2].mxu0  ;;  %v3988_v39 = vpop.f32.mrb[2].mxu1  ;;  %4000 = vmatprep.mubr.msk.f32.mxu0 %vm422_vm6, %v170_v36  ;;  %4261 = vmatpush3.bf16.msra.mxu0 %v4258_v30 }
 0x162   :  { %v332_v40 = vpop.f32.mrb[3].mxu0  ;;  %v413_v41 = vpop.f32.mrb[3].mxu1  ;;  %4263 = vmatprep.subr.bf16.mxu0 %v4262_v37 }
 0x168   :  { %4001 = vmatmul.mubr.msk.f32.vlgmr.msra.gmra.mrb[4].mxu0 %vm422_vm6, %v3973_v34 }
 0x169   :  { %4007 = vmatprep.mubr.msk.f32.mxu0 %vm422_vm6, %v332_v40  ;;  %4265 = vmatpush3.bf16.msra.mxu0 %v4262_v37 }
 0x16a   :  { %4267 = vmatprep.subr.bf16.mxu0 %v4266_v44 }
 0x170   :  { %4008 = vmatmul.mubr.msk.f32.vlgmr.msra.gmra.mrb[4].mxu0 %vm422_vm6, %v3983_v38 }
 0x171   :  { %4014 = vmatprep.mubr.msk.f32.mxu0 %vm422_vm6, %v413_v41  ;;  %4269 = vmatpush3.bf16.msra.mxu0 %v4266_v44 }
 0x178   :  { %4015 = vmatmul.mubr.msk.f32.vlgmr.msra.gmra.mrb[4].mxu0 %vm422_vm6, %v3988_v39 }
 0x179   :  { %4044 = vmatprep.mubr.msk.f32.mxu0 %vm97_vm3, %v74_v15 }
 0x24b   :  { %v4016_v53 = vpop.f32.mrb[4].mxu0 }
 0x24c   :  { %v758_v55 = vadd.f32 %v4016_v53, %v756_v51  ;;  %v740_v56 = vpop.f32.mrb[5].mxu0  ;;  %v1032_v53 = vld [vmem:[%s5085_s4 + $0x90] sm:$0xff] }
 0x24d   :  { %v757_v57 = vadd.f32 %v755_v52, %v740_v56 }
 0x24e   :  { %v766_v59 = vadd.f32 %v762_v50, %v758_v55 }
 0x24f   :  { %v765_v60 = vadd.f32 %v763_v54, %v757_v57 }
 0x251   :  { %v4271_v0 = vpack.c.bf16 %v766_v59, %v765_v60 }
 0x253   :  { %4273 = vmatpush3.bf16.msk.msra.mxu1 %vm4610_vm10, %v4271_v0  ;;  %v1035_v0 = vld [vmem:[%s5085_s4 + $0xa8] sm:$0xff] }
 0x254   :  { %4274 = vmatprep.subr.bf16.mxu1 %v4432_v45 }
 0x256   :  { %4022 = vmatmul.mubr.msk.f32.vlgmr.msra.gmra.mrb[4].mxu1 %vm767_vm12, %v4624_v1 }
 0x257   :  { %4276 = vmatpush3.bf16.msra.mxu1 %v4275_v2  ;;  %4032 = vmatprep.mubr.msk.f32.mxu1 %vm4433_vm7, %v4431_v10  ;;  %v1036_v2 = vld [vmem:[%s5085_s4 + $0xb0] sm:$0xff] }
 0x258   :  { %4277 = vmatprep.subr.bf16.mxu1 %v4432_v45  ;;  %v4295_v3 = vpack.c.bf16 %v1036_v2, %v1035_v0  ;;  %v2047_v2 = vld [vmem:[%s5087_s5 + $0x18] sm:$0xff] }
 0x25b   :  { %4279 = vmatpush3.bf16.msra.mxu1 %v4278_v8  ;;  %v1679_v8 = vrot.slane %v1043_v5, %v4595_v46 }
 0x25c   :  { %4280 = vmatprep.subr.bf16.mxu1 %v4432_v45 }
 0x25d   :  { %v1681_v12 = vmul.f32 0.0, %v1679_v8 }
 0x329   :  { %v841_v15 = vpop.f32.mrb[4].mxu1 }
 0x32a   :  { %v4023_v17 = vpop.f32.mrb[5].mxu1  ;;  %4033 = vmatmul.mubr.msk.f32.vlgmr.msra.gmra.mrb[6].mxu1 %vm849_vm13, %v841_v15 }
 0x32b   :  { %4282 = vmatpush3.bf16.msra.mxu1 %v4281_v13  ;;  %4039 = vmatprep.mubr.msk.f32.mxu1 %vm4433_vm7, %v4431_v10  ;;  %v1680_v13 = vmul.f32 %v4508_v11, %v1679_v8  ;;  %v1688_v17 = vmul.f32 %v1687_v9, %v4519_v16  ;;  %v1039_v16 = vld [vmem:[%s5085_s4 + $0xc8] sm:$0xff] }
 0x32e   :  { %4040 = vmatmul.mubr.msk.f32.vlgmr.msra.gmra.mrb[8].mxu1 %vm422_vm6, %v4494_v4 }
 0x32f   :  { %4049 = vmatprep.mubr.msk.f32.mxu1 %vm97_vm3, %v4515_v14 }
 0x3fd   :  { %v919_v19 = vpop.f32.mrb[6].mxu1 }
 0x3fe   :  { %v4034_v20 = vpop.f32.mrb[7].mxu1  ;;  %v920_v33 = vadd.f32 %v919_v19, %v848_v32  ;;  %v1038_v32 = vld [vmem:[%s5085_s4 + $0xc0] sm:$0xff] }
 0x401   :  { %v996_v28 = vpop.f32.mrb[8].mxu1 }
 0x402   :  { %v997_v29 = vadd.f32 %v996_v28, %v926_v27  ;;  %v4041_v30 = vpop.f32.mrb[9].mxu1 }
 0x403   :  { %v1037_v30 = vld [vmem:[%s5085_s4 + $0xb8] sm:$0xff] }
 0x404   :  { %1008 = vrot.lane.b32.xlu0 %v997_v29, %s4435_s16  ;;  %v1000_v14 = vadd.f32 %v997_v29, %v920_v33  ;;  %v4304_v11 = vpack.c.bf16 %v1038_v32, %v1037_v30  ;;  %v2205_v30 = vld [vmem:[%s5087_s5 + $0x38] sm:$0xff] }
 0x406   :  { %v3773_v34 = vmul.f32 -1.442695, %v1000_v14  ;;  %v1040_v14 = vld [vmem:[%s5085_s4 + $0xd0] sm:$0xff] }
 0x408   :  { %4385 = vpow2.f32 %v3773_v34  ;;  %v4307_v34 = vpack.c.bf16 %v1040_v14, %v1039_v16  ;;  %v4836_v16 = vld [vmem:[%s5087_s5 + $0x110] sm:$0xff] }
 0x409   :  { %v2051_v14 = vrot.slane %v4836_v16, %v4601_v48 }
 0x412   :  { %v4386_v35 = vpop.eup %4385 }
 0x413   :  { %v1004_v36 = vadd.f32 1.0, %v4386_v35  ;;  %v1042_v35 = vld [vmem:[%s5085_s4 + $0xe0] sm:$0xff] }
 0x415   :  { %4387 = vrcp.f32 %v1004_v36  ;;  %v4310_v36 = vpack.c.bf16 %v1042_v35, %v1041_v61 }
 0x41f   :  { %v4388_v37 = vpop.eup %4387 }
 0x420   :  { %v1018_v44 = vsub.f32 1.0, %v4388_v37 }
 0x476   :  { %v1009_v38 = vpop.permute.xlu0 %1008 }
 0x477   :  { %v1011_v39 = vmul.f32 %v4388_v37, %v1009_v38 }
 0x479   :  { %1013 = vrot.lane.b32.xlu1 %v1011_v39, %s4436_s17 }
 0x47d   :  { %1024 = vrot.lane.b32.xlu1 %v4494_v4, %s4437_s18  ;;  %v1031_v4 = vld [vmem:[%s5085_s4 + $0x88] sm:$0xff] }
 0x47e   :  { %v4283_v54 = vpack.c.bf16 %v1032_v53, %v1031_v4 }
 0x4eb   :  { %v1014_v40 = vpop.permute.xlu1 %1013 }
 0x4ec   :  { %v1016_v41 = vadd.f32 %v1014_v40, %v920_v33  ;;  %v1845_v40 = vrot.slane %v1043_v5, %v4653_v18 }
 0x4ee   :  { %4389 = vtanh.f32 %v1016_v41 }
 0x4ef   :  { %v1025_v43 = vpop.permute.xlu1 %1024 }
 0x4f0   :  { %v1027_v49 = vmul.f32 %v4388_v37, %v1025_v43 }
 0x4f8   :  { %v4390_v42 = vpop.eup %4389 }
 0x4f9   :  { %1020 = vrot.lane.b32.xlu0 %v4390_v42, %s4438_s19 }
 0x56b   :  { %v1021_v47 = vpop.permute.xlu0 %1020 }
 0x56c   :  { %v1023_v50 = vmul.f32 %v1021_v47, %v1018_v44  ;;  %v1768_v44 = vrot.slane %v1043_v5, %v4658_v31 }
 0x56e   :  { %v4664_v51 = vadd.f32 %v1027_v49, %v1023_v50 }
 0x570   :  { %1045 = vrot.lane.b32.xlu0 %v4664_v51, %s4438_s19 }
 0x5e2   :  { %v4668_v52 = vpop.permute.xlu0 %1045 }
 0x5e3   :  { %4042 = vmatprep.subr.mxu0 %v4668_v52  ;;  %4047 = vmatprep.subr.mxu1 %v4668_v52 }
 0x5e4   :  { %4043 = vmatpush3.msra.mxu0 %v4668_v52  ;;  %4048 = vmatpush3.msra.mxu1 %v4668_v52 }
 0x5e5   :  { %4045 = vmatmul.mubr.msk.f32.vlgmr.msra.gmra.mrb[6].mxu0 %vm97_vm3, %v4542_v24  ;;  %4050 = vmatmul.mubr.msk.f32.vlgmr.msra.gmra.mrb[10].mxu1 %vm97_vm3, %v4545_v25  ;;  %v1030_v24 = vld [vmem:[%s5085_s4 + $0x80] sm:$0xff] }
 0x5e6   :  { %4052 = vmatprep.subr.mxu0 %v4668_v52  ;;  %4057 = vmatprep.subr.mxu1 %v4668_v52 }
 0x5e7   :  { %4053 = vmatpush3.msra.mxu0 %v4668_v52  ;;  %4054 = vmatprep.mubr.msk.f32.mxu0 %vm97_vm3, %v4539_v23  ;;  %v1029_v23 = vld [vmem:[%s5085_s4 + $0x78] sm:$0xff] }
 0x5e8   :  { %4058 = vmatpush3.msra.mxu1 %v4668_v52  ;;  %4059 = vmatprep.mubr.msk.f32.mxu1 %vm97_vm3, %v4548_v26  ;;  %v4287_v25 = vpack.c.bf16 %v1030_v24, %v1029_v23 }
 0x5e9   :  { %4055 = vmatmul.mubr.msk.f32.vlgmr.msra.gmra.mrb[8].mxu0 %vm97_vm3, %v4533_v21  ;;  %4060 = vmatmul.mubr.msk.f32.vlgmr.msra.gmra.mrb[12].mxu1 %vm97_vm3, %v4536_v22  ;;  %v1033_v21 = vld [vmem:[%s5085_s4 + $0x98] sm:$0xff]  ;;  %v1034_v22 = vld [vmem:[%s5085_s4 + $0xa0] sm:$0xff] }
 0x5ea   :  { %4284 = vmatprep.subr.bf16.mxu0 %v4283_v54  ;;  %4299 = vmatprep.subr.bf16.mxu1 %v4432_v45  ;;  %v4291_v58 = vpack.c.bf16 %v1034_v22, %v1033_v21 }
 0x5eb   :  { %4286 = vmatpush3.bf16.msra.mxu0 %v4283_v54  ;;  %4094 = vmatprep.mubr.msk.f32.mxu1 %vm4433_vm7, %v4431_v10 }
 0x5ec   :  { %4288 = vmatprep.subr.bf16.mxu0 %v4287_v25 }
 0x6b8   :  { %v4046_v26 = vpop.f32.mrb[6].mxu0  ;;  %v4051_v55 = vpop.f32.mrb[10].mxu1 }
 0x6b9   :  { %v1114_v56 = vpop.f32.mrb[7].mxu0  ;;  %v1189_v57 = vpop.f32.mrb[11].mxu1 }
 0x6ba   :  { %4066 = vmatprep.mubr.msk.f32.mxu0 %vm422_vm6, %v1189_v57 }
 0x6bb   :  { %4067 = vmatmul.mubr.msk.f32.vlgmr.msra.gmra.mrb[10].mxu0 %vm422_vm6, %v4051_v55 }
 0x6bc   :  { %v4056_v59 = vpop.f32.mrb[8].mxu0  ;;  %v4061_v60 = vpop.f32.mrb[12].mxu1  ;;  %4073 = vmatprep.mubr.msk.f32.mxu0 %vm422_vm6, %v1114_v56  ;;  %4290 = vmatpush3.bf16.msra.mxu0 %v4287_v25 }
 0x6bd   :  { %v1264_v62 = vpop.f32.mrb[9].mxu0  ;;  %v1339_v63 = vpop.f32.mrb[13].mxu1  ;;  %4292 = vmatprep.subr.bf16.mxu0 %v4291_v58 }
 0x6c3   :  { %4074 = vmatmul.mubr.msk.f32.vlgmr.msra.gmra.mrb[10].mxu0 %vm422_vm6, %v4046_v26 }
 0x6c4   :  { %4080 = vmatprep.mubr.msk.f32.mxu0 %vm422_vm6, %v1264_v62  ;;  %4294 = vmatpush3.bf16.msra.mxu0 %v4291_v58  ;;  %v1965_v62 = vld [vmem:[%s5087_s5] sm:$0xff] }
 0x6c5   :  { %4296 = vmatprep.subr.bf16.mxu0 %v4295_v3 }
 0x6cb   :  { %4081 = vmatmul.mubr.msk.f32.vlgmr.msra.gmra.mrb[10].mxu0 %vm422_vm6, %v4056_v59 }
 0x6cc   :  { %4087 = vmatprep.mubr.msk.f32.mxu0 %vm422_vm6, %v1339_v63  ;;  %4298 = vmatpush3.bf16.msra.mxu0 %v4295_v3  ;;  %v1966_v63 = vld [vmem:[%s5087_s5 + $0x8] sm:$0xff] }
 0x6cd   :  { %4312 = vmatprep.subr.bf16.mxu0 %v4432_v45  ;;  %v4313_v0 = vpack.c.bf16 %v1966_v63, %v1965_v62  ;;  %v2478_v63 = vld [vmem:[%s5087_s5 + $0x40] sm:$0xff] }
 0x6d3   :  { %4088 = vmatmul.mubr.msk.f32.vlgmr.msra.gmra.mrb[10].mxu0 %vm422_vm6, %v4061_v60 }
 0x6d4   :  { %4119 = vmatprep.mubr.msk.f32.mxu0 %vm4433_vm7, %v4431_v10  ;;  %4314 = vmatpush3.bf16.msra.mxu0 %v4313_v0  ;;  %v2480_v0 = vld [vmem:[%s5087_s5 + $0x50] sm:$0xff] }
 0x6d5   :  { %4318 = vmatprep.subr.bf16.mxu0 %v4432_v45 }
 0x7a6   :  { %v4089_v15 = vpop.f32.mrb[10].mxu0 }
 0x7a7   :  { %v1683_v19 = vadd.f32 %v4089_v15, %v1681_v12  ;;  %v1665_v20 = vpop.f32.mrb[11].mxu0 }
 0x7a8   :  { %v1682_v27 = vadd.f32 %v1680_v13, %v1665_v20 }
 0x7a9   :  { %v1691_v28 = vadd.f32 %v1687_v9, %v1683_v19 }
 0x7aa   :  { %v1690_v29 = vadd.f32 %v1688_v17, %v1682_v27  ;;  %v2128_v27 = vld [vmem:[%s5087_s5 + $0x20] sm:$0xff] }
 0x7ac   :  { %v4300_v33 = vpack.c.bf16 %v1691_v28, %v1690_v29  ;;  %v2129_v28 = vld [vmem:[%s5087_s5 + $0x28] sm:$0xff]  ;;  %v2204_v29 = vld [vmem:[%s5087_s5 + $0x30] sm:$0xff] }
 0x7ad   :  { %v4319_v32 = vpack.c.bf16 %v2129_v28, %v2128_v27 }
 0x7ae   :  { %4302 = vmatpush3.bf16.msk.msra.mxu1 %vm4610_vm10, %v4300_v33  ;;  %v4322_v33 = vpack.c.bf16 %v2205_v30, %v2204_v29 }
 0x7af   :  { %4303 = vmatprep.subr.bf16.mxu1 %v4432_v45 }
 0x7b1   :  { %4095 = vmatmul.mubr.msk.f32.vlgmr.msra.gmra.mrb[14].mxu1 %vm767_vm12, %v4624_v1 }
 0x7b2   :  { %4305 = vmatpush3.bf16.msra.mxu1 %v4304_v11  ;;  %4105 = vmatprep.mubr.msk.f32.mxu1 %vm4433_vm7, %v4431_v10 }
 0x7b3   :  { %4306 = vmatprep.subr.bf16.mxu1 %v4432_v45 }
 0x7b6   :  { %4308 = vmatpush3.bf16.msra.mxu1 %v4307_v34 }
 0x7b7   :  { %4309 = vmatprep.subr.bf16.mxu1 %v4432_v45 }
 0x884   :  { %v1761_v1 = vpop.f32.mrb[14].mxu1 }
 0x885   :  { %v4096_v37 = vpop.f32.mrb[15].mxu1  ;;  %4106 = vmatmul.mubr.msk.f32.vlgmr.msra.gmra.mrb[16].mxu1 %vm849_vm13, %v1761_v1 }
 0x886   :  { %4311 = vmatpush3.bf16.msra.mxu1 %v4310_v36  ;;  %4112 = vmatprep.mubr.msk.f32.mxu1 %vm4433_vm7, %v4431_v10  ;;  %v2209_v37 = vrot.slane %v4836_v16, %v4653_v18  ;;  %v2288_v18 = vadd.s32 1, %v4502_v6 }
 0x887   :  { %4315 = vmatprep.subr.bf16.mxu1 %v4432_v45 }
 0x889   :  { %4113 = vmatmul.mubr.msk.f32.vlgmr.msra.gmra.mrb[18].mxu1 %vm422_vm6, %v4668_v52 }
 0x88a   :  { %4126 = vmatprep.mubr.msk.f32.mxu1 %vm4433_vm7, %v4431_v10 }
 0x958   :  { %v1838_v38 = vpop.f32.mrb[16].mxu1 }
 0x959   :  { %v4107_v39 = vpop.f32.mrb[17].mxu1  ;;  %v1839_v47 = vadd.f32 %v1838_v38, %v1768_v44 }
 0x95c   :  { %v1914_v41 = vpop.f32.mrb[18].mxu1 }
 0x95d   :  { %v1915_v42 = vadd.f32 %v1914_v41, %v1845_v40  ;;  %v4114_v43 = vpop.f32.mrb[19].mxu1 }
 0x95f   :  { %1926 = vrot.lane.b32.xlu1 %v1915_v42, %s4435_s16  ;;  %v1918_v49 = vadd.f32 %v1915_v42, %v1839_v47 }
 0x961   :  { %v3794_v50 = vmul.f32 -1.442695, %v1918_v49 }
 0x963   :  { %4391 = vpow2.f32 %v3794_v50 }
 0x96d   :  { %v4392_v4 = vpop.eup %4391 }
 0x96e   :  { %v1922_v52 = vadd.f32 1.0, %v4392_v4 }
 0x970   :  { %4393 = vrcp.f32 %v1922_v52 }
 0x97a   :  { %v4394_v53 = vpop.eup %4393 }
 0x97b   :  { %v1936_v22 = vsub.f32 1.0, %v4394_v53  ;;  %v1942_v55 = vmul.f32 %v4394_v53, %v4664_v51  ;;  %v2046_v51 = vld [vmem:[%s5087_s5 + $0x10] sm:$0xff] }
 0x97c   :  { %v4316_v3 = vpack.c.bf16 %v2047_v2, %v2046_v51  ;;  %v2479_v51 = vld [vmem:[%s5087_s5 + $0x48] sm:$0xff] }
 0x97d   :  { %v4325_v2 = vpack.c.bf16 %v2479_v51, %v2478_v63  ;;  %v2742_v63 = vld [vmem:[%s5087_s5 + $0x68] sm:$0x3f]  ;;  %v2821_v51 = vld [vmem:[%s5087_s5 + $0x70] sm:$0xff] }
 0x97e   :  { %4317 = vmatpush3.bf16.msra.mxu1 %v4316_v3  ;;  %v4872_v3 = vld [vmem:[%s5089_s3] sm:$0x3] }
 0x97f   :  { %4321 = vmatprep.subr.bf16.mxu1 %v4432_v45 }
 0x9d1   :  { %v1927_v54 = vpop.permute.xlu1 %1926 }
 0x9d2   :  { %v1929_v23 = vmul.f32 %v4394_v53, %v1927_v54  ;;  %v2286_v54 = vmul.u32 4, %v4502_v6 }
 0x9d4   :  { %1931 = vrot.lane.b32.xlu0 %v1929_v23, %s4436_s17  ;;  %v2289_v23 = vmul.u32 4, %v2288_v18  ;;  %vm2287_vm2 = vcmp.ge.s32.totalorder %v4504_v7, %v2286_v54 }
 0x9d6   :  { %vm2290_vm4 = vcmp.lt.s32.totalorder %v4504_v7, %v2289_v23 }
 0x9d7   :  { %vm2291_vm5 = vmand %vm2287_vm2, %vm2290_vm4  ;;  %vm2718_vm2 = vcmask 41984  }
 0xa46   :  { %v1932_v24 = vpop.permute.xlu0 %1931 }
 0xa47   :  { %v1934_v25 = vadd.f32 %v1932_v24, %v1839_v47  ;;  %v1970_v24 = vrot.slane %v4836_v16, %v4595_v46 }
 0xa49   :  { %4395 = vtanh.f32 %v1934_v25 }
 0xa53   :  { %v4396_v21 = vpop.eup %4395 }
 0xa54   :  { %1938 = vrot.lane.b32.xlu1 %v4396_v21, %s4438_s19  ;;  %v2133_v21 = vrot.slane %v4836_v16, %v4658_v31 }
 0xac6   :  { %v1939_v26 = vpop.permute.xlu1 %1938 }
 0xac7   :  { %v1941_v56 = vmul.f32 %v1939_v26, %v1936_v22 }
 0xac9   :  { %v1943_v57 = vadd.f32 %v1942_v55, %v1941_v56  ;;  %v3801_v55 = vsel %vm2291_vm5, 1.0, %v4431_v10  ;;  %vm2747_vm5 = vcmask 1045504  }
 0xacb   :  { %v1944_v58 = vmul.f32 %v1943_v57, %v1943_v57 }
 0xacd   :  { %1946 = vrot.lane.b32.xlu0 %v1944_v58, %s4438_s19 }
 0xb3f   :  { %v1947_v59 = vpop.permute.xlu0 %1946 }
 0xb40   :  { %v1949_v60 = vsel %vm422_vm6, %v1947_v59, 0.0 }
 0xb41   :  { %1950 = vadd.xlane.f32.xlu1 %v1949_v60 }
 0xbce   :  { %v1951_v5 = vpop.xlane.xlu1 %1950 }
 0xbcf   :  { %4397 = vrsqrt.f32 %v1951_v5  ;;  %vm1954_vm14 = vcmp.eq.f32.partialorder %v1951_v5, inf  ;;  %v1957_v12 = vand.u32 2147483648, %v1951_v5  ;;  %vm1956_vm15 = vcmp.eq.f32.partialorder %v1951_v5, 0.0 }
 0xbd9   :  { %v4398_v8 = vpop.eup %4397 }
 0xbda   :  { %v1953_v9 = vmul.f32 %v4398_v8, %v1951_v5 }
 0xbdc   :  { %v1955_v13 = vsel %vm1954_vm14, %v1951_v5, %v1953_v9 }
 0xbdd   :  { %v1958_v15 = vsel %vm1956_vm15, %v1957_v12, %v1955_v13  ;;  %vm2714_vm15 = vcmp.eq.s32.totalorder %v4504_v7, 0 }
 0xbde   :  { %v1959_v17 = vmax.f32 %v1958_v15, 1e-12 }
 0xbe0   :  { %4399 = vrcp.f32 %v1959_v17 }
 0xbea   :  { %v4400_v19 = vpop.eup %4399 }
 0xbeb   :  { %v1961_v20 = vmul.f32 %v4400_v19, %v1943_v57 }
 0xbed   :  { %1972 = vrot.lane.b32.xlu0 %v1961_v20, %s4438_s19 }
 0xc5f   :  { %v4805_v11 = vpop.permute.xlu0 %1972 }
 0xc60   :  { %3726 = vst.msk [vmem:[%s5088_s6] sm:$0xf] %vm3725_vm0, %v4805_v11  ;;  %4120 = vmatmul.mubr.msk.f32.vlgmr.msra.gmra.mrb[12].mxu0 %vm422_vm6, %v4805_v11  ;;  %4127 = vmatmul.mubr.msk.f32.vlgmr.msra.gmra.mrb[20].mxu1 %vm422_vm6, %v4805_v11  ;;  %vm2715_vm0 = vcmp.eq.s32.totalorder %v4504_v7, 1 }
 0xc61   :  { %3830 = vst.msk [vmem:[%s5088_s6 + $0x4] sm:$0xf0] %vm3730_vm1, %v4805_v11  ;;  %4320 = vmatpush3.bf16.msra.mxu0 %v4319_v32  ;;  %4323 = vmatpush3.bf16.msra.mxu1 %v4322_v33  ;;  %vm2716_vm1 = vmor %vm2714_vm15, %vm2715_vm0  ;;  %vm3732_vm15 = vcmask 123905  }
 0xc62   :  { %4133 = vmatprep.mubr.msk.f32.mxu0 %vm4433_vm7, %v4431_v10  ;;  %4140 = vmatprep.mubr.msk.f32.mxu1 %vm4433_vm7, %v4431_v10 }
 0xc63   :  { %4143 = vmatprep.subr.mxu0 %v4431_v10  ;;  %4148 = vmatprep.subr.mxu1 %v4431_v10 }
 0xc64   :  { %4134 = vmatmul.mubr.msk.f32.vlgmr.msra.gmra.mrb[14].mxu0 %vm422_vm6, %v4805_v11  ;;  %4141 = vmatmul.mubr.msk.f32.vlgmr.msra.gmra.mrb[22].mxu1 %vm422_vm6, %v4805_v11 }
 0xc65   :  { %4145 = vmatprep.mubr.msk.f32.mxu0 %vm4433_vm7, %v4431_v10  ;;  %4150 = vmatprep.mubr.msk.f32.mxu1 %vm4433_vm7, %v4431_v10 }
 0xd33   :  { %v2042_v34 = vpop.f32.mrb[12].mxu0  ;;  %v2118_v61 = vpop.f32.mrb[20].mxu1 }
 0xd34   :  { %v2119_v35 = vadd.f32 %v2118_v61, %v2051_v14  ;;  %v4121_v36 = vpop.f32.mrb[13].mxu0  ;;  %v4128_v1 = vpop.f32.mrb[21].mxu1  ;;  %v2043_v25 = vadd.f32 %v2042_v34, %v1970_v24  ;;  %v2635_v14 = vld [vmem:[%s5087_s5 + $0x58] sm:$0xff]  ;;  %v2636_v34 = vld [vmem:[%s5087_s5 + $0x60] sm:$0xff]  ;;  %v2639_v24 = vsub.s32 5, %v4502_v6 }
 0xd35   :  { %v4328_v61 = vpack.c.bf16 %v2636_v34, %v2635_v14 }
 0xd36   :  { %v3797_v38 = vmul.f32 -1.442695, %v2119_v35 }
 0xd37   :  { %v2200_v39 = vpop.f32.mrb[14].mxu0  ;;  %v2276_v40 = vpop.f32.mrb[22].mxu1 }
 0xd38   :  { %4401 = vpow2.f32 %v3797_v38  ;;  %v2277_v41 = vadd.f32 %v2276_v40, %v2209_v37  ;;  %v4135_v42 = vpop.f32.mrb[15].mxu0  ;;  %v4142_v43 = vpop.f32.mrb[23].mxu1  ;;  %v2201_v56 = vadd.f32 %v2200_v39, %v2133_v21 }
 0xd3a   :  { %v3800_v44 = vmul.f32 -1.442695, %v2277_v41  ;;  %v2629_v41 = vsub.s32 4, %v4502_v6 }
 0xd3c   :  { %4403 = vpow2.f32 %v3800_v44  ;;  %v2630_v42 = vrot.slane %v4836_v16, %v2629_v41 }
 0xd42   :  { %v4402_v47 = vpop.eup %4401 }
 0xd43   :  { %v2125_v49 = vadd.f32 1.0, %v4402_v47 }
 0xd45   :  { %4405 = vrcp.f32 %v2125_v49  ;;  %v2823_v49 = vld [vmem:[%s5087_s5 + $0x80] sm:$0xff] }
 0xd46   :  { %v4404_v50 = vpop.eup %4403 }
 0xd47   :  { %v2283_v4 = vadd.f32 1.0, %v4404_v50  ;;  %v2824_v50 = vld [vmem:[%s5087_s5 + $0x88] sm:$0xff] }
 0xd49   :  { %4407 = vrcp.f32 %v2283_v4 }
 0xd4f   :  { %v4406_v52 = vpop.eup %4405 }
 0xd50   :  { %2296 = vperm.xlu0 %4384, %v4406_v52  }
 0xd53   :  { %v4408_v53 = vpop.eup %4407 }
 0xd54   :  { %2390 = vperm.xlu1 %4383, %v4408_v53   ;;  %v4331_v53 = vpack.c.bf16 %v2824_v50, %v2823_v49 }
 0xdcf   :  { %v2297_v22 = vpop.permute.xlu0 %2296 }
 0xdd0   :  { %v2299_v26 = vmul.f32 %v2297_v22, %v2043_v25  ;;  %v2640_v25 = vrot.slane %v4836_v16, %v2639_v24  ;;  %v3175_v24 = vld [vmem:[%s5087_s5 + $0xc8] sm:$0xff] }
 0xdd2   :  { %4144 = vmatpush3.msra.mxu0 %v2299_v26 }
 0xdd3   :  { %4146 = vmatmul.mubr.msk.f32.vlgmr.msra.gmra.mrb[16].mxu0 %vm97_vm3, %v3801_v55  ;;  %v2391_v57 = vpop.permute.xlu1 %2390  ;;  %4153 = vmatprep.subr.mxu0 %v4431_v10 }
 0xdd4   :  { %v2393_v58 = vmul.f32 %v2391_v57, %v2201_v56  ;;  %4155 = vmatprep.mubr.msk.f32.mxu0 %vm4433_vm7, %v4431_v10  ;;  %4154 = vmatpush3.msra.mxu0 %v2480_v0  ;;  %v2822_v0 = vld [vmem:[%s5087_s5 + $0x78] sm:$0xff] }
 0xdd5   :  { %4327 = vmatprep.subr.bf16.mxu0 %v4432_v45 }
 0xdd6   :  { %4149 = vmatpush3.msra.mxu1 %v2393_v58 }
 0xdd7   :  { %4151 = vmatmul.mubr.msk.f32.vlgmr.msra.gmra.mrb[24].mxu1 %vm97_vm3, %v3801_v55  ;;  %4324 = vmatprep.subr.bf16.mxu1 %v4432_v45 }
 0xdd8   :  { %4162 = vmatprep.mubr.msk.f32.mxu1 %vm4433_vm7, %v4431_v10  ;;  %4156 = vmatmul.mubr.msk.f32.vlgmr.msra.gmra.mrb[18].mxu0 %vm97_vm3, %v4872_v3 }
 0xdd9   :  { %4326 = vmatpush3.bf16.msra.mxu1 %v4325_v2  ;;  %4169 = vmatprep.mubr.msk.f32.mxu0 %vm4433_vm7, %v4431_v10 }
 0xdda   :  { %4172 = vmatprep.subr.mxu1 %v4431_v10  ;;  %4329 = vmatpush3.bf16.msra.mxu0 %v4328_v61 }
 0xddb   :  { %4330 = vmatprep.subr.bf16.mxu0 %v4432_v45 }
 0xea6   :  { %v2369_v31 = vpop.f32.mrb[16].mxu0 }
 0xea7   :  { %v2373_v59 = vmul.f32 %v2369_v31, %v2369_v31  ;;  %v4147_v60 = vpop.f32.mrb[17].mxu0 }
 0xea9   :  { %v2375_v62 = vsel %vm2374_vm8, %v2373_v59, 0.0 }
 0xeaa   :  { %2376 = vadd.xlane.f32.xlu0 %v2375_v62  ;;  %v2460_v5 = vpop.f32.mrb[24].mxu1 }
 0xeab   :  { %v2464_v8 = vmul.f32 %v2460_v5, %v2460_v5  ;;  %v4152_v9 = vpop.f32.mrb[25].mxu1  ;;  %v2550_v32 = vpop.f32.mrb[18].mxu0 }
 0xeac   :  { %v4157_v33 = vpop.f32.mrb[19].mxu0  ;;  %v2971_v9 = vld [vmem:[%s5087_s5 + $0x90] sm:$0xff] }
 0xead   :  { %v2465_v12 = vsel %vm2374_vm8, %v2464_v8, 0.0  ;;  %v3045_v33 = vsub.s32 6, %v4502_v6 }
 0xeae   :  { %2466 = vadd.xlane.f32.xlu1 %v2465_v12 }
 0xf37   :  { %v2377_v13 = vpop.xlane.xlu0 %2376 }
 0xf38   :  { %4409 = vrsqrt.f32 %v2377_v13  ;;  %vm2380_vm9 = vcmp.eq.f32.partialorder %v2377_v13, inf  ;;  %v2383_v19 = vand.u32 2147483648, %v2377_v13  ;;  %vm2382_vm10 = vcmp.eq.f32.partialorder %v2377_v13, 0.0 }
 0xf3b   :  { %v2467_v35 = vpop.xlane.xlu1 %2466 }
 0xf3c   :  { %vm2470_vm11 = vcmp.eq.f32.partialorder %v2467_v35, inf  ;;  %v2473_v37 = vand.u32 2147483648, %v2467_v35  ;;  %vm2472_vm12 = vcmp.eq.f32.partialorder %v2467_v35, 0.0 }
 0xf42   :  { %v4410_v15 = vpop.eup %4409 }
 0xf43   :  { %v2379_v17 = vmul.f32 %v4410_v15, %v2377_v13 }
 0xf45   :  { %v2381_v20 = vsel %vm2380_vm9, %v2377_v13, %v2379_v17  ;;  %vm2743_vm9 = vcmask 48128   ;;  %v3051_v17 = vld [vmem:[%s5087_s5 + $0x98] sm:$0xff] }
 0xf46   :  { %v2384_v27 = vsel %vm2382_vm10, %v2383_v19, %v2381_v20  ;;  %v3052_v19 = vld [vmem:[%s5087_s5 + $0xa0] sm:$0xff] }
 0xf47   :  { %v2385_v28 = vmax.f32 %v2384_v27, 1e-12  ;;  %v4337_v27 = vpack.c.bf16 %v3052_v19, %v3051_v17  ;;  %v3399_v17 = vld [vmem:[%s5087_s5 + $0xe0] sm:$0xff] }
 0xf49   :  { %4411 = vrcp.f32 %v2385_v28  ;;  %v3053_v28 = vld [vmem:[%s5087_s5 + $0xa8] sm:$0xff] }
 0xf4a   :  { %4413 = vrsqrt.f32 %v2467_v35 }
 0xf53   :  { %v4412_v29 = vpop.eup %4411 }
 0xf54   :  { %v4881_v30 = vmul.f32 %v4412_v29, %v2369_v31  ;;  %v4414_v36 = vpop.eup %4413  ;;  %v2730_v31 = vcvt.s32.f32 %v4504_v7  ;;  %v3054_v29 = vld [vmem:[%s5087_s5 + $0xb0] sm:$0xff] }
 0xf55   :  { %v2469_v1 = vmul.f32 %v4414_v36, %v2467_v35 }
 0xf56   :  { %4163 = vmatmul.mubr.msk.f32.vlgmr.msra.gmra.mrb[26].mxu1 %vm422_vm6, %v4881_v30 }
 0xf57   :  { %4174 = vmatprep.mubr.msk.f32.mxu1 %vm4433_vm7, %v4431_v10  ;;  %v2471_v38 = vsel %vm2470_vm11, %v2467_v35, %v2469_v1  ;;  %4173 = vmatpush3.msk.msra.mxu1 %vm2747_vm5, %v2742_v63  ;;  %v3046_v35 = vrot.slane %v4836_v16, %v3045_v33  ;;  %v3173_v1 = vld [vmem:[%s5087_s5 + $0xb8] sm:$0xff]  ;;  %v3168_v33 = vadd.s32 6, %v4504_v7 }
 0xf58   :  { %v2474_v39 = vsel %vm2472_vm12, %v2473_v37, %v2471_v38  ;;  %4333 = vmatprep.subr.bf16.mxu1 %v4432_v45  ;;  %v3174_v37 = vld [vmem:[%s5087_s5 + $0xc0] sm:$0xff] }
 0xf59   :  { %v2475_v40 = vmax.f32 %v2474_v39, 1e-12 }
 0xf5b   :  { %4415 = vrcp.f32 %v2475_v40  ;;  %v4346_v40 = vpack.c.bf16 %v3174_v37, %v3173_v1 }
 0xf65   :  { %v4416_v18 = vpop.eup %4415 }
 0xf66   :  { %v2477_v23 = vmul.f32 %v4416_v18, %v2460_v5  ;;  %v4334_v5 = vpack.c.bf16 %v2822_v0, %v2821_v51 }
0x1029   :  { %v2623_v43 = vpop.f32.mrb[26].mxu1 }
0x102a   :  { %v2624_v44 = vadd.f32 %v2623_v43, %v2550_v32  ;;  %v4164_v47 = vpop.f32.mrb[27].mxu1  ;;  %v4340_v32 = vpack.c.bf16 %v3054_v29, %v3053_v28  ;;  %v3163_v28 = vadd.s32 4, %v4504_v7 }
0x102c   :  { %v2631_v4 = vadd.f32 %v2630_v42, %v2624_v44  ;;  %v3057_v44 = vsub.s32 7, %v4502_v6 }
0x102e   :  { %vm2632_vm14 = vcmp.ge.f32.partialorder %v2631_v4, 0.0  ;;  %v2633_v52 = vmul.f32 0.2, %v2631_v4  ;;  %v3058_v47 = vrot.slane %v4836_v16, %v3057_v44  ;;  %v3176_v16 = vld [vmem:[%s5087_s5 + $0xd0] sm:$0xff] }
0x1030   :  { %v2634_v54 = vsel %vm2632_vm14, %v2631_v4, %v2633_v52  ;;  %vm3727_vm14 = vcmask 122880  }
0x1031   :  { %4170 = vmatmul.mubr.msk.f32.vlgmr.msra.gmra.mrb[20].mxu0 %vm422_vm6, %v2634_v54 }
0x1032   :  { %4332 = vmatpush3.bf16.msra.mxu0 %v4331_v53  ;;  %4181 = vmatprep.mubr.msk.f32.mxu0 %vm4433_vm7, %v4431_v10 }
0x1033   :  { %4191 = vmatprep.subr.mxu0 %v4431_v10 }
0x1035   :  { %4182 = vmatmul.mubr.msk.f32.vlgmr.msra.gmra.mrb[22].mxu0 %vm422_vm6, %v2477_v23 }
0x1036   :  { %4193 = vmatprep.mubr.msk.f32.mxu0 %vm4433_vm7, %v4431_v10  ;;  %4192 = vmatpush3.msra.mxu0 %v2971_v9 }
0x1037   :  { %4342 = vmatprep.subr.bf16.mxu0 %v4432_v45 }
0x1039   :  { %4194 = vmatmul.mubr.msk.f32.vlgmr.msra.gmra.mrb[24].mxu0 %vm97_vm3, %v4872_v3 }
0x103a   :  { %4211 = vmatprep.mubr.msk.f32.mxu0 %vm4433_vm7, %v4431_v10 }
0x1104   :  { %v2710_v21 = vpop.f32.mrb[20].mxu0 }
0x1105   :  { %v2711_v22 = vadd.f32 %v2710_v21, %v2640_v25  ;;  %v4171_v26 = vpop.f32.mrb[21].mxu0  ;;  %v4343_v25 = vpack.c.bf16 %v3176_v16, %v3175_v24 }
0x1107   :  { %v4913_v55 = vsel %vm2716_vm1, -1e+30, %v2711_v22  ;;  %4344 = vmatpush3.bf16.msra.mxu0 %v4343_v25  ;;  %vm3718_vm1 = vcmask 91184  }
0x1108   :  { %v2894_v56 = vpop.f32.mrb[22].mxu0  ;;  %v2719_v57 = vsel %vm2718_vm2, %v4913_v55, -inf  ;;  %4214 = vmatprep.subr.mxu0 %v4431_v10 }
0x1109   :  { %2720 = vmax.xlane.f32.xlu0 %v2719_v57  ;;  %v4183_v58 = vpop.f32.mrb[23].mxu0 }
0x110c   :  { %v3038_v15 = vpop.f32.mrb[24].mxu0 }
0x110d   :  { %v4195_v20 = vpop.f32.mrb[25].mxu0 }
0x1196   :  { %v4918_v59 = vpop.xlane.xlu0 %2720 }
0x1197   :  { %vm2731_vm4 = vcmp.eq.f32.partialorder %v4913_v55, %v4918_v59  ;;  %v2722_v42 = vsub.f32 %v4913_v55, %v4918_v59 }
0x1198   :  { %v2732_v60 = vsel %vm2731_vm4, %v2730_v31, 6.0 }
0x1199   :  { %v2733_v62 = vsel %vm2718_vm2, %v2732_v60, inf  ;;  %v2723_v43 = vmul.f32 1.442695, %v2722_v42  ;;  %v1964_v42 = vld [vmem:[%s5087_s5 + $0x118] sm:$0x3] }
0x119a   :  { %2734 = vmin.xlane.f32.xlu0 %v2733_v62 }
0x119b   :  { %4417 = vpow2.f32 %v2723_v43  ;;  %v3621_v43 = vrot.slane %v1964_v42, %v4595_v46 }
0x11a5   :  { %v4418_v54 = vpop.eup %4417 }
0x11a6   :  { %v2725_v23 = vsel %vm2718_vm2, %v4418_v54, 0.0 }
0x1227   :  { %v4933_v2 = vpop.xlane.xlu0 %2734 }
0x1228   :  { %vm2736_vm10 = vcmp.eq.f32.partialorder %v2730_v31, %v4933_v2  ;;  %vm2739_vm0 = vcmp.ne.f32.partialorder %v4933_v2, 2.0 }
0x1229   :  { %v3807_v8 = vsel %vm2736_vm10, 1.0, %v4431_v10  ;;  %v3808_v0 = vsel %vm2739_vm0, 1.0, %v4431_v10  ;;  %vm3254_vm10 = vcmask 1041408  }
0x122a   :  { %3713 = vst.msk [vmem:[%s5090_s7] sm:$0x3] %vm2718_vm2, %v3807_v8  ;;  %4175 = vmatmul.mubr.msk.f32.vlgmr.msra.gmra.mrb[28].mxu1 %vm2743_vm9, %v3807_v8  ;;  %vm3720_vm2 = vcmask 99424   ;;  %v3146_v8 = vmul.u32 4, %v4504_v7 }
0x122b   :  { %4335 = vmatpush3.bf16.msra.mxu1 %v4334_v5  ;;  %4188 = vmatprep.mubr.msk.f32.mxu1 %vm4433_vm7, %v4431_v10  ;;  %v3148_v5 = vadd.s32 1, %v4504_v7 }
0x122c   :  { %4336 = vmatprep.subr.bf16.mxu1 %v4432_v45  ;;  %vm3147_vm4 = vcmp.ge.s32.totalorder %v4502_v6, %v3146_v8 }
0x122d   :  { %v3149_v9 = vmul.u32 4, %v3148_v5 }
0x122f   :  { %vm3150_vm5 = vcmp.lt.s32.totalorder %v4502_v6, %v3149_v9 }
0x1230   :  { %vm3151_vm9 = vmand %vm3147_vm4, %vm3150_vm5 }
0x1231   :  { %v3815_v2 = vsel %vm3151_vm9, 1.0, %v4431_v10 }
0x12fd   :  { %v2817_v12 = vpop.f32.mrb[28].mxu1 }
0x12fe   :  { %v4176_v13 = vpop.f32.mrb[29].mxu1  ;;  %4189 = vmatmul.mubr.msk.f32.vlgmr.msra.gmra.mrb[30].mxu1 %vm422_vm6, %v2817_v12 }
0x12ff   :  { %4204 = vmatprep.mubr.msk.f32.mxu1 %vm4433_vm7, %v4431_v10  ;;  %4338 = vmatpush3.bf16.msra.mxu1 %v4337_v27  ;;  %v3400_v13 = vld [vmem:[%s5087_s5 + $0xe8] sm:$0xff]  ;;  %v3158_v27 = vadd.s32 2, %v4504_v7 }
0x1300   :  { %4339 = vmatprep.subr.bf16.mxu1 %v4432_v45 }
0x1303   :  { %4341 = vmatpush3.bf16.msra.mxu1 %v4340_v32 }
0x1304   :  { %4345 = vmatprep.subr.bf16.mxu1 %v4432_v45 }
0x13d1   :  { %v2967_v14 = vpop.f32.mrb[30].mxu1 }
0x13d2   :  { %v2968_v34 = vadd.f32 %v2967_v14, %v2894_v56  ;;  %v4190_v61 = vpop.f32.mrb[31].mxu1 }
0x13d4   :  { %v3042_v36 = vadd.f32 %v3038_v15, %v2968_v34  ;;  %v3398_v15 = vld [vmem:[%s5087_s5 + $0xd8] sm:$0xff] }
0x13d5   :  { %v4349_v20 = vpack.c.bf16 %v3399_v17, %v3398_v15 }
0x13d6   :  { %v3047_v38 = vadd.f32 %v3046_v35, %v3042_v36 }
0x13d8   :  { %vm3048_vm11 = vcmp.ge.f32.partialorder %v3047_v38, 0.0  ;;  %v3049_v39 = vmul.f32 0.2, %v3047_v38 }
0x13da   :  { %v3050_v41 = vsel %vm3048_vm11, %v3047_v38, %v3049_v39  ;;  %vm3250_vm11 = vcmask 15360  }
0x13db   :  { %4205 = vmatmul.mubr.msk.f32.vlgmr.msra.gmra.mrb[32].mxu1 %vm849_vm13, %v3050_v41 }
0x13dc   :  { %4347 = vmatpush3.bf16.msra.mxu1 %v4346_v40  ;;  %4223 = vmatprep.mubr.msk.f32.mxu1 %vm4433_vm7, %v4431_v10  ;;  %v3628_v40 = vld [vmem:[%s5087_s5 + $0x100] sm:$0xff] }
0x13dd   :  { %4238 = vmatprep.subr.mxu1 %v4431_v10 }
0x13df   :  { %4224 = vmatmul.mubr.msk.f32.vlgmr.msra.gmra.mrb[34].mxu1 %vm422_vm6, %v4805_v11 }
0x13e0   :  { %4240 = vmatprep.mubr.msk.f32.mxu1 %vm4433_vm7, %v4431_v10 }
0x14ae   :  { %v3128_v49 = vpop.f32.mrb[32].mxu1 }
0x14af   :  { %v3129_v50 = vadd.f32 %v3128_v49, %v3058_v47  ;;  %v4206_v4 = vpop.f32.mrb[33].mxu1 }
0x14b1   :  { %v3132_v52 = vmul.f32 %v3129_v50, %v3129_v50 }
0x14b2   :  { %v4989_v53 = vpop.f32.mrb[34].mxu1 }
0x14b3   :  { %v4225_v18 = vpop.f32.mrb[35].mxu1  ;;  %v3133_v11 = vsel %vm2374_vm8, %v3132_v52, 0.0  ;;  %v3633_v52 = vrot.slane %v1964_v42, %v4601_v48 }
0x14b4   :  { %3134 = vadd.xlane.f32.xlu0 %v3133_v11 }
0x14b8   :  { %2726 = vadd.xlane.f32.xlu0 %v2725_v23 }
0x1541   :  { %v3135_v21 = vpop.xlane.xlu0 %3134 }
0x1542   :  { %4419 = vrsqrt.f32 %v3135_v21  ;;  %vm3138_vm8 = vcmp.eq.f32.partialorder %v3135_v21, inf  ;;  %v3141_v56 = vand.u32 2147483648, %v3135_v21  ;;  %vm3140_vm12 = vcmp.eq.f32.partialorder %v3135_v21, 0.0 }
0x1545   :  { %v2727_v22 = vpop.xlane.xlu0 %2726 }
0x1546   :  { %4421 = vrcp.f32 %v2727_v22 }
0x154c   :  { %v4420_v26 = vpop.eup %4419 }
0x154d   :  { %v3137_v55 = vmul.f32 %v4420_v26, %v3135_v21 }
0x154f   :  { %v3139_v57 = vsel %vm3138_vm8, %v3135_v21, %v3137_v55  ;;  %vm3154_vm8 = vcmp.eq.s32.totalorder %v4502_v6, %v4504_v7  ;;  %v3626_v7 = vld [vmem:[%s5087_s5 + $0xf0] sm:$0xff] }
0x1550   :  { %v4422_v58 = vpop.eup %4421  ;;  %v3142_v31 = vsel %vm3140_vm12, %v3141_v56, %v3139_v57  ;;  %vm3159_vm12 = vcmp.eq.s32.totalorder %v4502_v6, %v3158_v27  ;;  %v3816_v29 = vsel %vm3154_vm8, 1.0, %v4431_v10 }
0x1551   :  { %v3143_v59 = vmax.f32 %v3142_v31, 1e-12  ;;  %v2729_v60 = vmul.f32 %v4422_v58, %v4418_v54 }
0x1553   :  { %4423 = vrcp.f32 %v3143_v59  ;;  %3715 = vrot.lane.b32.xlu0 %v2729_v60, %s4439_s2 }
0x155d   :  { %v4424_v62 = vpop.eup %4423 }
0x155e   :  { %v3145_v63 = vmul.f32 %v4424_v62, %v3129_v50 }
0x1560   :  { %4212 = vmatmul.mubr.msk.f32.vlgmr.msra.gmra.mrb[26].mxu0 %vm422_vm6, %v3145_v63  ;;  %3728 = vst.msk [vmem:[%s5088_s6 + $0x4] sm:$0x1] %vm3727_vm14, %v3145_v63  ;;  %vm3722_vm14 = vcmask 7168  }
0x1561   :  { %3831 = vst.msk [vmem:[%s5088_s6 + $0xb] sm:$0x2] %vm3732_vm15, %v3145_v63  ;;  %4216 = vmatprep.mubr.msk.f32.mxu0 %vm4433_vm7, %v4431_v10 }
0x15c5   :  { %v3716_v51 = vpop.permute.xlu0 %3715 }
0x15c6   :  { %3719 = vst.msk [vmem:[%s5090_s7] sm:$0x3] %vm3718_vm1, %v3716_v51 }
0x15c7   :  { %3721 = vst.msk [vmem:[%s5090_s7] sm:$0x3] %vm3720_vm2, %v3808_v0 }
0x1633   :  { %v3246_v12 = vpop.f32.mrb[26].mxu0 }
0x1634   :  { %v4213_v19 = vpop.f32.mrb[27].mxu0  ;;  %4215 = vmatpush3.msk.msra.mxu0 %vm3254_vm10, %v3246_v12 }
0x1635   :  { %4217 = vmatmul.mubr.msk.f32.vlgmr.msra.gmra.mrb[28].mxu0 %vm3250_vm11, %v3815_v2  ;;  %4226 = vmatprep.subr.mxu0 %v4431_v10 }
0x1636   :  { %4227 = vmatpush3.msra.mxu0 %v3400_v13  ;;  %4228 = vmatprep.mubr.msk.f32.mxu0 %vm4433_vm7, %v4431_v10 }
0x1637   :  { %4348 = vmatprep.subr.bf16.mxu0 %v4432_v45 }
0x1639   :  { %4229 = vmatmul.mubr.msk.f32.vlgmr.msra.gmra.mrb[30].mxu0 %vm97_vm3, %v4872_v3  ;;  %v3817_v3 = vsel %vm3159_vm12, 1.0, %v4431_v10  ;;  %vm3164_vm3 = vcmp.eq.s32.totalorder %v4502_v6, %v3163_v28 }
0x163a   :  { %4350 = vmatpush3.bf16.msra.mxu0 %v4349_v20  ;;  %4235 = vmatprep.mubr.msk.f32.mxu0 %vm4433_vm7, %v4431_v10  ;;  %v3162_v34 = vadd.f32 %v3817_v3, %v3816_v29  ;;  %v3818_v61 = vsel %vm3164_vm3, 1.0, %v4431_v10 }
0x163c   :  { %v3167_v35 = vadd.f32 %v3818_v61, %v3162_v34 }
0x1641   :  { %4236 = vmatmul.mubr.msk.f32.vlgmr.msra.gmra.mrb[30].mxu0 %vm422_vm6, %v4881_v30  ;;  %vm3169_vm6 = vcmp.eq.s32.totalorder %v4502_v6, %v3168_v33  ;;  %v3627_v6 = vld [vmem:[%s5087_s5 + $0xf8] sm:$0xff] }
0x1642   :  { %v3819_v36 = vsel %vm3169_vm6, 1.0, %v4431_v10  ;;  %v4352_v39 = vpack.c.bf16 %v3627_v6, %v3626_v7 }
0x1643   :  { %v3172_v1 = vadd.f32 %v3819_v36, %v3167_v35 }
0x1708   :  { %v3324_v32 = vpop.f32.mrb[28].mxu0 }
0x1709   :  { %v3395_v30 = vadd.f32 %v4989_v53, %v3324_v32  ;;  %v4218_v14 = vpop.f32.mrb[29].mxu0 }
0x1714   :  { %v3537_v37 = vpop.f32.mrb[30].mxu0 }
0x1715   :  { %v4237_v38 = vpop.f32.mrb[31].mxu0  ;;  %4239 = vmatpush3.msk.msra.mxu1 %vm3254_vm10, %v3537_v37 }
0x1716   :  { %4241 = vmatmul.mubr.msk.f32.vlgmr.msra.gmra.mrb[36].mxu1 %vm3250_vm11, %v3172_v1  ;;  %4351 = vmatprep.subr.bf16.mxu1 %v4432_v45 }
0x1717   :  { %4251 = vmatprep.mubr.msk.f32.mxu1 %vm4433_vm7, %v4431_v10  ;;  %4353 = vmatpush3.bf16.msra.mxu1 %v4352_v39  ;;  %v3629_v10 = vld [vmem:[%s5087_s5 + $0x108] sm:$0xff] }
0x1718   :  { %4354 = vmatprep.subr.bf16.mxu1 %v4432_v45  ;;  %v4355_v41 = vpack.c.bf16 %v3629_v10, %v3628_v40 }
0x171b   :  { %4356 = vmatpush3.bf16.msra.mxu1 %v4355_v41 }
0x17e9   :  { %v3613_v44 = vpop.f32.mrb[36].mxu1 }
0x17ea   :  { %v3617_v47 = vadd.f32 %v3613_v44, %v3395_v30  ;;  %v4242_v49 = vpop.f32.mrb[37].mxu1 }
0x17ec   :  { %v3622_v45 = vadd.f32 %v3621_v43, %v3617_v47 }
0x17ee   :  { %vm3623_vm7 = vcmp.ge.f32.partialorder %v3622_v45, 0.0  ;;  %v3624_v50 = vmul.f32 0.2, %v3622_v45 }
0x17f0   :  { %v3625_v4 = vsel %vm3623_vm7, %v3622_v45, %v3624_v50 }
0x17f1   :  { %4252 = vmatmul.mubr.msk.f32.vlgmr.msra.gmra.mrb[38].mxu1 %vm849_vm13, %v3625_v4 }
0x18c4   :  { %v3703_v53 = vpop.f32.mrb[38].mxu1 }
0x18c5   :  { %v3704_v18 = vadd.f32 %v3703_v53, %v3633_v52  ;;  %v4253_v11 = vpop.f32.mrb[39].mxu1 }
0x18c7   :  { %v3829_v54 = vmul.f32 -1.442695, %v3704_v18 }
0x18c9   :  { %4425 = vpow2.f32 %v3829_v54 }
0x18d3   :  { %v4426_v23 = vpop.eup %4425 }
0x18d4   :  { %v3710_v24 = vadd.f32 1.0, %v4426_v23 }
0x18d6   :  { %4427 = vrcp.f32 %v3710_v24 }
0x18e0   :  { %v4428_v46 = vpop.eup %4427 }
0x18e1   :  { %3723 = vst.msk [vmem:[%s5091_s8] sm:$0xff] %vm3722_vm14, %v4428_v46 }

</bundles_post_ra>
